<compile_context>
chip_gen: v7x
topology: tpu7x:2x2x1
jax: 0.10.0
libtpu: 0.0.40
codegen_flags: <defaults>
</compile_context>

<pallas_src>
import functools

import jax
import jax.numpy as jnp
from jax.experimental import pallas as pl
from jax.experimental.pallas import tpu as pltpu


def char_rnn_kernel(x_ref,        # (seq*batch, n_fac)  embedded tokens, time-major flattened
                    wih0_ref,     # (n_fac, 4H)
                    whh0_ref,     # (H, 4H)
                    b0_ref,       # (1, 4H)   b_ih0 + b_hh0
                    w1_ref,       # (2H, 4H)  concat([W_ih1.T, W_hh1.T], axis=0)
                    b1_ref,       # (1, 4H)   b_ih1 + b_hh1
                    wout_ref,     # (H, V)
                    bout_ref,     # (1, V)
                    out_ref,      # (seq*batch, V) log-probs
                    *, seq, batch, hidden):
    H = hidden

    # Hoist all weight/bias loads (and bias broadcasts) out of the recurrence.
    wih0 = wih0_ref[...]
    whh0 = whh0_ref[...]
    b0 = b0_ref[...]
    w1 = w1_ref[...]
    b1 = b1_ref[...]
    wout = wout_ref[...]
    bout = bout_ref[...]

    # Layer-0 input projection is independent of the recurrence: one big matmul
    # for all timesteps instead of one per step.
    xg0 = jnp.dot(x_ref[...], wih0, preferred_element_type=jnp.float32) + b0

    def gates_to_state(gates, c):
        # Two full-width transcendental passes over the fused gates, slice after.
        # PyTorch gate order: i, f, g, o.
        sg = jax.nn.sigmoid(gates)
        th = jnp.tanh(gates)
        i = sg[:, 0 * H:1 * H]
        f = sg[:, 1 * H:2 * H]
        g = th[:, 2 * H:3 * H]
        o = sg[:, 3 * H:4 * H]
        c_new = f * c + i * g
        h_new = o * jnp.tanh(c_new)
        return h_new, c_new

    zeros = jnp.zeros((batch, H), jnp.float32)
    h0, c0, h1, c1 = zeros, zeros, zeros, zeros   # init_hidden_state: zeros

    # Short, static recurrence: fully unrolled; h/c live in vregs across steps.
    h1_steps = []
    for t in range(seq):
        g0 = xg0[t * batch:(t + 1) * batch, :] + jnp.dot(
            h0, whh0, preferred_element_type=jnp.float32)
        h0, c0 = gates_to_state(g0, c0)

        # TODO(synk): nn.LSTM applies dropout(p=0.3) between layers in training
        # mode only; eval-mode (identity) semantics are implemented here.
        xh1 = jnp.concatenate([h0, h1], axis=-1)                 # (batch, 2H)
        g1 = jnp.dot(xh1, w1, preferred_element_type=jnp.float32) + b1
        h1, c1 = gates_to_state(g1, c1)
        h1_steps.append(h1)

    # Projection + log_softmax hoisted out of the loop: one batched matmul,
    # one batched reduction, one bulk store.
    h_all = jnp.concatenate(h1_steps, axis=0)                    # (seq*batch, H)
    logits = jnp.dot(h_all, wout, preferred_element_type=jnp.float32) + bout
    m = jnp.max(logits, axis=-1, keepdims=True)
    shifted = logits - m
    lse = jnp.log(jnp.sum(jnp.exp(shifted), axis=-1, keepdims=True))
    out_ref[...] = shifted - lse


def init_params(key, vocab_size, n_fac, n_hidden):
    ks = jax.random.split(key, 12)
    s = 0.1
    H = n_hidden
    params = {
        "emb":   s * jax.random.normal(ks[0], (vocab_size, n_fac), jnp.float32),
        # PyTorch LSTM weights: W_ih_l0 (4H, n_fac), W_hh_l0 (4H, H), biases (4H,)
        "w_ih0": s * jax.random.normal(ks[1], (4 * H, n_fac), jnp.float32),
        "w_hh0": s * jax.random.normal(ks[2], (4 * H, H), jnp.float32),
        "b_ih0": s * jax.random.normal(ks[3], (4 * H,), jnp.float32),
        "b_hh0": s * jax.random.normal(ks[4], (4 * H,), jnp.float32),
        "w_ih1": s * jax.random.normal(ks[5], (4 * H, H), jnp.float32),
        "w_hh1": s * jax.random.normal(ks[6], (4 * H, H), jnp.float32),
        "b_ih1": s * jax.random.normal(ks[7], (4 * H,), jnp.float32),
        "b_hh1": s * jax.random.normal(ks[8], (4 * H,), jnp.float32),
        # Linear(n_hidden, vocab_size): weight (V, H), bias (V,)
        "w_out": s * jax.random.normal(ks[9], (vocab_size, H), jnp.float32),
        "b_out": s * jax.random.normal(ks[10], (vocab_size,), jnp.float32),
    }
    return params


def char_rnn_forward(inp, params):
    """inp: (seq, batch) int32 token ids -> (seq, batch, vocab) log-probs."""
    emb_tbl = params["emb"]
    vocab_size, n_fac = emb_tbl.shape
    H = params["w_hh0"].shape[1]
    seq, batch = inp.shape

    # TODO(synk): embedding gather kept as plain-JAX glue; for long sequences it
    # could be fused into the kernel via scalar-prefetch + pl.Element gather.
    x = emb_tbl[inp].reshape(seq * batch, n_fac)       # (seq*batch, n_fac)

    # Pre-transpose / fuse weights so the kernel does x @ W with lane-dense outputs.
    wih0 = params["w_ih0"].T                           # (n_fac, 4H)
    whh0 = params["w_hh0"].T                           # (H, 4H)
    b0 = (params["b_ih0"] + params["b_hh0"]).reshape(1, 4 * H)
    w1 = jnp.concatenate([params["w_ih1"].T, params["w_hh1"].T], axis=0)  # (2H, 4H)
    b1 = (params["b_ih1"] + params["b_hh1"]).reshape(1, 4 * H)
    wout = params["w_out"].T                           # (H, V)
    bout = params["b_out"].reshape(1, vocab_size)

    # TODO(synk): at scaled sizes add a seq grid (recurrence axis "arbitrary"),
    # a "parallel" batch axis for v7x's 2 TCs, bf16 matmul inputs, and an
    # explicit vmem_limit_bytes budget (v7x has 64 MiB VMEM).
    vmem = pl.BlockSpec(memory_space=pltpu.MemorySpace.VMEM)
    kernel = functools.partial(char_rnn_kernel, seq=seq, batch=batch, hidden=H)
    out = pl.pallas_call(
        kernel,
        out_shape=jax.ShapeDtypeStruct((seq * batch, vocab_size), jnp.float32),
        in_specs=[vmem] * 8,
        out_specs=vmem,
    )(x, wih0, whh0, b0, w1, b1, wout, bout)
    return out.reshape(seq, batch, vocab_size)


def char_rnn_reference(inp, params):
    """Pure-JAX reference matching PyTorch eval-mode semantics."""
    emb = params["emb"][inp]                           # (seq, batch, n_fac)
    H = params["w_hh0"].shape[1]
    seq, batch = inp.shape

    def cell(x, h, c, wih, whh, bih, bhh):
        gates = x @ wih.T + h @ whh.T + bih + bhh
        i, f, g, o = jnp.split(gates, 4, axis=-1)
        i, f, o = jax.nn.sigmoid(i), jax.nn.sigmoid(f), jax.nn.sigmoid(o)
        g = jnp.tanh(g)
        c_new = f * c + i * g
        return o * jnp.tanh(c_new), c_new

    h0 = c0 = h1 = c1 = jnp.zeros((batch, H), jnp.float32)
    outs = []
    for t in range(seq):
        h0, c0 = cell(emb[t], h0, c0, params["w_ih0"], params["w_hh0"],
                      params["b_ih0"], params["b_hh0"])
        h1, c1 = cell(h0, h1, c1, params["w_ih1"], params["w_hh1"],
                      params["b_ih1"], params["b_hh1"])
        logits = h1 @ params["w_out"].T + params["b_out"]
        outs.append(jax.nn.log_softmax(logits, axis=-1))
    return jnp.stack(outs, axis=0)


if __name__ == "__main__":
    vocab_size = 64
    n_fac = 16
    n_hidden = 32
    seq_len = 8
    batch = 4

    key = jax.random.PRNGKey(0)
    pkey, ikey = jax.random.split(key)
    params = init_params(pkey, vocab_size, n_fac, n_hidden)
    inp = jax.random.randint(ikey, (seq_len, batch), 0, vocab_size, dtype=jnp.int32)

    log_probs = char_rnn_forward(inp, params)
    jax.block_until_ready(log_probs)

    assert log_probs.shape == (seq_len, batch, vocab_size)
    assert bool(jnp.all(jnp.isfinite(log_probs)))

    ref = char_rnn_reference(inp, params)
    assert bool(jnp.allclose(log_probs, ref, atol=1e-4, rtol=1e-4))

    print("KERNEL_OK")
</pallas_src>

<mosaic_0001>
module attributes {stable_mosaic.version = 11 : i64} {
  func.func @char_rnn_kernel(%arg0: memref<32x16xf32, #tpu.memory_space<vmem>>, %arg1: memref<16x128xf32, #tpu.memory_space<vmem>>, %arg2: memref<32x128xf32, #tpu.memory_space<vmem>>, %arg3: memref<1x128xf32, #tpu.memory_space<vmem>>, %arg4: memref<64x128xf32, #tpu.memory_space<vmem>>, %arg5: memref<1x128xf32, #tpu.memory_space<vmem>>, %arg6: memref<32x64xf32, #tpu.memory_space<vmem>>, %arg7: memref<1x64xf32, #tpu.memory_space<vmem>>, %arg8: memref<32x64xf32, #tpu.memory_space<vmem>>) attributes {dimension_semantics = [], scalar_prefetch = 0 : i64, scratch_operands = 0 : i64, tpu.core_type = #tpu.core_type<tc>} {
    %c0 = arith.constant 0 : index
    %c0_0 = arith.constant 0 : index
    %0 = vector.load %arg1[%c0, %c0_0] : memref<16x128xf32, #tpu.memory_space<vmem>>, vector<16x128xf32>
    %c0_1 = arith.constant 0 : index
    %c0_2 = arith.constant 0 : index
    %1 = vector.load %arg2[%c0_1, %c0_2] : memref<32x128xf32, #tpu.memory_space<vmem>>, vector<32x128xf32>
    %c0_3 = arith.constant 0 : index
    %c0_4 = arith.constant 0 : index
    %2 = vector.load %arg3[%c0_3, %c0_4] : memref<1x128xf32, #tpu.memory_space<vmem>>, vector<1x128xf32>
    %c0_5 = arith.constant 0 : index
    %c0_6 = arith.constant 0 : index
    %3 = vector.load %arg4[%c0_5, %c0_6] : memref<64x128xf32, #tpu.memory_space<vmem>>, vector<64x128xf32>
    %c0_7 = arith.constant 0 : index
    %c0_8 = arith.constant 0 : index
    %4 = vector.load %arg5[%c0_7, %c0_8] : memref<1x128xf32, #tpu.memory_space<vmem>>, vector<1x128xf32>
    %c0_9 = arith.constant 0 : index
    %c0_10 = arith.constant 0 : index
    %5 = vector.load %arg6[%c0_9, %c0_10] : memref<32x64xf32, #tpu.memory_space<vmem>>, vector<32x64xf32>
    %c0_11 = arith.constant 0 : index
    %c0_12 = arith.constant 0 : index
    %6 = vector.load %arg7[%c0_11, %c0_12] : memref<1x64xf32, #tpu.memory_space<vmem>>, vector<1x64xf32>
    %c0_13 = arith.constant 0 : index
    %c0_14 = arith.constant 0 : index
    %7 = vector.load %arg0[%c0_13, %c0_14] : memref<32x16xf32, #tpu.memory_space<vmem>>, vector<32x16xf32>
    %cst = arith.constant dense<0.000000e+00> : vector<32x128xf32>
    %8 = tpu.matmul %7, %0, %cst {dimension_numbers = #tpu.dot_dimension_numbers<[1], [0], [0], [1], [0, 0, 1, 1], [], []>} : vector<32x16xf32>, vector<16x128xf32>, vector<32x128xf32> -> vector<32x128xf32>
    %9 = vector.broadcast %2 : vector<1x128xf32> to vector<32x128xf32>
    %10 = arith.addf %8, %9 : vector<32x128xf32>
    %cst_15 = arith.constant 0.000000e+00 : f32
    %11 = vector.broadcast %cst_15 : f32 to vector<4x32xf32>
    %12 = vector.extract_strided_slice %10 {offsets = [0, 0], sizes = [4, 128], strides = [1, 1]} : vector<32x128xf32> to vector<4x128xf32>
    %cst_16 = arith.constant dense<0.000000e+00> : vector<4x128xf32>
    %13 = tpu.matmul %11, %1, %cst_16 {dimension_numbers = #tpu.dot_dimension_numbers<[1], [0], [0], [1], [0, 0, 1, 1], [], []>} : vector<4x32xf32>, vector<32x128xf32>, vector<4x128xf32> -> vector<4x128xf32>
    %14 = arith.addf %12, %13 : vector<4x128xf32>
    %15 = arith.negf %14 : vector<4x128xf32>
    %16 = math.exp %15 : vector<4x128xf32>
    %cst_17 = arith.constant 1.000000e+00 : f32
    %17 = vector.broadcast %cst_17 : f32 to vector<4x128xf32>
    %18 = arith.addf %17, %16 : vector<4x128xf32>
    %19 = arith.divf %17, %18 : vector<4x128xf32>
    %20 = math.tanh %14 : vector<4x128xf32>
    %21 = vector.extract_strided_slice %19 {offsets = [0, 0], sizes = [4, 32], strides = [1, 1]} : vector<4x128xf32> to vector<4x32xf32>
    %22 = vector.extract_strided_slice %19 {offsets = [0, 32], sizes = [4, 32], strides = [1, 1]} : vector<4x128xf32> to vector<4x32xf32>
    %23 = vector.extract_strided_slice %20 {offsets = [0, 64], sizes = [4, 32], strides = [1, 1]} : vector<4x128xf32> to vector<4x32xf32>
    %24 = vector.extract_strided_slice %19 {offsets = [0, 96], sizes = [4, 32], strides = [1, 1]} : vector<4x128xf32> to vector<4x32xf32>
    %25 = arith.mulf %22, %11 : vector<4x32xf32>
    %26 = arith.mulf %21, %23 : vector<4x32xf32>
    %27 = arith.addf %25, %26 : vector<4x32xf32>
    %28 = math.tanh %27 : vector<4x32xf32>
    %29 = arith.mulf %24, %28 : vector<4x32xf32>
    %30 = tpu.concatenate %29, %11 in 1 : vector<4x32xf32>, vector<4x32xf32> -> vector<4x64xf32>
    %cst_18 = arith.constant dense<0.000000e+00> : vector<4x128xf32>
    %31 = tpu.matmul %30, %3, %cst_18 {dimension_numbers = #tpu.dot_dimension_numbers<[1], [0], [0], [1], [0, 0, 1, 1], [], []>} : vector<4x64xf32>, vector<64x128xf32>, vector<4x128xf32> -> vector<4x128xf32>
    %32 = vector.broadcast %4 : vector<1x128xf32> to vector<4x128xf32>
    %33 = arith.addf %31, %32 : vector<4x128xf32>
    %34 = arith.negf %33 : vector<4x128xf32>
    %35 = math.exp %34 : vector<4x128xf32>
    %cst_19 = arith.constant 1.000000e+00 : f32
    %36 = vector.broadcast %cst_19 : f32 to vector<4x128xf32>
    %37 = arith.addf %36, %35 : vector<4x128xf32>
    %38 = arith.divf %36, %37 : vector<4x128xf32>
    %39 = math.tanh %33 : vector<4x128xf32>
    %40 = vector.extract_strided_slice %38 {offsets = [0, 0], sizes = [4, 32], strides = [1, 1]} : vector<4x128xf32> to vector<4x32xf32>
    %41 = vector.extract_strided_slice %38 {offsets = [0, 32], sizes = [4, 32], strides = [1, 1]} : vector<4x128xf32> to vector<4x32xf32>
    %42 = vector.extract_strided_slice %39 {offsets = [0, 64], sizes = [4, 32], strides = [1, 1]} : vector<4x128xf32> to vector<4x32xf32>
    %43 = vector.extract_strided_slice %38 {offsets = [0, 96], sizes = [4, 32], strides = [1, 1]} : vector<4x128xf32> to vector<4x32xf32>
    %44 = arith.mulf %41, %11 : vector<4x32xf32>
    %45 = arith.mulf %40, %42 : vector<4x32xf32>
    %46 = arith.addf %44, %45 : vector<4x32xf32>
    %47 = math.tanh %46 : vector<4x32xf32>
    %48 = arith.mulf %43, %47 : vector<4x32xf32>
    %49 = vector.extract_strided_slice %10 {offsets = [4, 0], sizes = [4, 128], strides = [1, 1]} : vector<32x128xf32> to vector<4x128xf32>
    %cst_20 = arith.constant dense<0.000000e+00> : vector<4x128xf32>
    %50 = tpu.matmul %29, %1, %cst_20 {dimension_numbers = #tpu.dot_dimension_numbers<[1], [0], [0], [1], [0, 0, 1, 1], [], []>} : vector<4x32xf32>, vector<32x128xf32>, vector<4x128xf32> -> vector<4x128xf32>
    %51 = arith.addf %49, %50 : vector<4x128xf32>
    %52 = arith.negf %51 : vector<4x128xf32>
    %53 = math.exp %52 : vector<4x128xf32>
    %cst_21 = arith.constant 1.000000e+00 : f32
    %54 = vector.broadcast %cst_21 : f32 to vector<4x128xf32>
    %55 = arith.addf %54, %53 : vector<4x128xf32>
    %56 = arith.divf %54, %55 : vector<4x128xf32>
    %57 = math.tanh %51 : vector<4x128xf32>
    %58 = vector.extract_strided_slice %56 {offsets = [0, 0], sizes = [4, 32], strides = [1, 1]} : vector<4x128xf32> to vector<4x32xf32>
    %59 = vector.extract_strided_slice %56 {offsets = [0, 32], sizes = [4, 32], strides = [1, 1]} : vector<4x128xf32> to vector<4x32xf32>
    %60 = vector.extract_strided_slice %57 {offsets = [0, 64], sizes = [4, 32], strides = [1, 1]} : vector<4x128xf32> to vector<4x32xf32>
    %61 = vector.extract_strided_slice %56 {offsets = [0, 96], sizes = [4, 32], strides = [1, 1]} : vector<4x128xf32> to vector<4x32xf32>
    %62 = arith.mulf %59, %27 : vector<4x32xf32>
    %63 = arith.mulf %58, %60 : vector<4x32xf32>
    %64 = arith.addf %62, %63 : vector<4x32xf32>
    %65 = math.tanh %64 : vector<4x32xf32>
    %66 = arith.mulf %61, %65 : vector<4x32xf32>
    %67 = tpu.concatenate %66, %48 in 1 : vector<4x32xf32>, vector<4x32xf32> -> vector<4x64xf32>
    %cst_22 = arith.constant dense<0.000000e+00> : vector<4x128xf32>
    %68 = tpu.matmul %67, %3, %cst_22 {dimension_numbers = #tpu.dot_dimension_numbers<[1], [0], [0], [1], [0, 0, 1, 1], [], []>} : vector<4x64xf32>, vector<64x128xf32>, vector<4x128xf32> -> vector<4x128xf32>
    %69 = vector.broadcast %4 : vector<1x128xf32> to vector<4x128xf32>
    %70 = arith.addf %68, %69 : vector<4x128xf32>
    %71 = arith.negf %70 : vector<4x128xf32>
    %72 = math.exp %71 : vector<4x128xf32>
    %cst_23 = arith.constant 1.000000e+00 : f32
    %73 = vector.broadcast %cst_23 : f32 to vector<4x128xf32>
    %74 = arith.addf %73, %72 : vector<4x128xf32>
    %75 = arith.divf %73, %74 : vector<4x128xf32>
    %76 = math.tanh %70 : vector<4x128xf32>
    %77 = vector.extract_strided_slice %75 {offsets = [0, 0], sizes = [4, 32], strides = [1, 1]} : vector<4x128xf32> to vector<4x32xf32>
    %78 = vector.extract_strided_slice %75 {offsets = [0, 32], sizes = [4, 32], strides = [1, 1]} : vector<4x128xf32> to vector<4x32xf32>
    %79 = vector.extract_strided_slice %76 {offsets = [0, 64], sizes = [4, 32], strides = [1, 1]} : vector<4x128xf32> to vector<4x32xf32>
    %80 = vector.extract_strided_slice %75 {offsets = [0, 96], sizes = [4, 32], strides = [1, 1]} : vector<4x128xf32> to vector<4x32xf32>
    %81 = arith.mulf %78, %46 : vector<4x32xf32>
    %82 = arith.mulf %77, %79 : vector<4x32xf32>
    %83 = arith.addf %81, %82 : vector<4x32xf32>
    %84 = math.tanh %83 : vector<4x32xf32>
    %85 = arith.mulf %80, %84 : vector<4x32xf32>
    %86 = vector.extract_strided_slice %10 {offsets = [8, 0], sizes = [4, 128], strides = [1, 1]} : vector<32x128xf32> to vector<4x128xf32>
    %cst_24 = arith.constant dense<0.000000e+00> : vector<4x128xf32>
    %87 = tpu.matmul %66, %1, %cst_24 {dimension_numbers = #tpu.dot_dimension_numbers<[1], [0], [0], [1], [0, 0, 1, 1], [], []>} : vector<4x32xf32>, vector<32x128xf32>, vector<4x128xf32> -> vector<4x128xf32>
    %88 = arith.addf %86, %87 : vector<4x128xf32>
    %89 = arith.negf %88 : vector<4x128xf32>
    %90 = math.exp %89 : vector<4x128xf32>
    %cst_25 = arith.constant 1.000000e+00 : f32
    %91 = vector.broadcast %cst_25 : f32 to vector<4x128xf32>
    %92 = arith.addf %91, %90 : vector<4x128xf32>
    %93 = arith.divf %91, %92 : vector<4x128xf32>
    %94 = math.tanh %88 : vector<4x128xf32>
    %95 = vector.extract_strided_slice %93 {offsets = [0, 0], sizes = [4, 32], strides = [1, 1]} : vector<4x128xf32> to vector<4x32xf32>
    %96 = vector.extract_strided_slice %93 {offsets = [0, 32], sizes = [4, 32], strides = [1, 1]} : vector<4x128xf32> to vector<4x32xf32>
    %97 = vector.extract_strided_slice %94 {offsets = [0, 64], sizes = [4, 32], strides = [1, 1]} : vector<4x128xf32> to vector<4x32xf32>
    %98 = vector.extract_strided_slice %93 {offsets = [0, 96], sizes = [4, 32], strides = [1, 1]} : vector<4x128xf32> to vector<4x32xf32>
    %99 = arith.mulf %96, %64 : vector<4x32xf32>
    %100 = arith.mulf %95, %97 : vector<4x32xf32>
    %101 = arith.addf %99, %100 : vector<4x32xf32>
    %102 = math.tanh %101 : vector<4x32xf32>
    %103 = arith.mulf %98, %102 : vector<4x32xf32>
    %104 = tpu.concatenate %103, %85 in 1 : vector<4x32xf32>, vector<4x32xf32> -> vector<4x64xf32>
    %cst_26 = arith.constant dense<0.000000e+00> : vector<4x128xf32>
    %105 = tpu.matmul %104, %3, %cst_26 {dimension_numbers = #tpu.dot_dimension_numbers<[1], [0], [0], [1], [0, 0, 1, 1], [], []>} : vector<4x64xf32>, vector<64x128xf32>, vector<4x128xf32> -> vector<4x128xf32>
    %106 = vector.broadcast %4 : vector<1x128xf32> to vector<4x128xf32>
    %107 = arith.addf %105, %106 : vector<4x128xf32>
    %108 = arith.negf %107 : vector<4x128xf32>
    %109 = math.exp %108 : vector<4x128xf32>
    %cst_27 = arith.constant 1.000000e+00 : f32
    %110 = vector.broadcast %cst_27 : f32 to vector<4x128xf32>
    %111 = arith.addf %110, %109 : vector<4x128xf32>
    %112 = arith.divf %110, %111 : vector<4x128xf32>
    %113 = math.tanh %107 : vector<4x128xf32>
    %114 = vector.extract_strided_slice %112 {offsets = [0, 0], sizes = [4, 32], strides = [1, 1]} : vector<4x128xf32> to vector<4x32xf32>
    %115 = vector.extract_strided_slice %112 {offsets = [0, 32], sizes = [4, 32], strides = [1, 1]} : vector<4x128xf32> to vector<4x32xf32>
    %116 = vector.extract_strided_slice %113 {offsets = [0, 64], sizes = [4, 32], strides = [1, 1]} : vector<4x128xf32> to vector<4x32xf32>
    %117 = vector.extract_strided_slice %112 {offsets = [0, 96], sizes = [4, 32], strides = [1, 1]} : vector<4x128xf32> to vector<4x32xf32>
    %118 = arith.mulf %115, %83 : vector<4x32xf32>
    %119 = arith.mulf %114, %116 : vector<4x32xf32>
    %120 = arith.addf %118, %119 : vector<4x32xf32>
    %121 = math.tanh %120 : vector<4x32xf32>
    %122 = arith.mulf %117, %121 : vector<4x32xf32>
    %123 = vector.extract_strided_slice %10 {offsets = [12, 0], sizes = [4, 128], strides = [1, 1]} : vector<32x128xf32> to vector<4x128xf32>
    %cst_28 = arith.constant dense<0.000000e+00> : vector<4x128xf32>
    %124 = tpu.matmul %103, %1, %cst_28 {dimension_numbers = #tpu.dot_dimension_numbers<[1], [0], [0], [1], [0, 0, 1, 1], [], []>} : vector<4x32xf32>, vector<32x128xf32>, vector<4x128xf32> -> vector<4x128xf32>
    %125 = arith.addf %123, %124 : vector<4x128xf32>
    %126 = arith.negf %125 : vector<4x128xf32>
    %127 = math.exp %126 : vector<4x128xf32>
    %cst_29 = arith.constant 1.000000e+00 : f32
    %128 = vector.broadcast %cst_29 : f32 to vector<4x128xf32>
    %129 = arith.addf %128, %127 : vector<4x128xf32>
    %130 = arith.divf %128, %129 : vector<4x128xf32>
    %131 = math.tanh %125 : vector<4x128xf32>
    %132 = vector.extract_strided_slice %130 {offsets = [0, 0], sizes = [4, 32], strides = [1, 1]} : vector<4x128xf32> to vector<4x32xf32>
    %133 = vector.extract_strided_slice %130 {offsets = [0, 32], sizes = [4, 32], strides = [1, 1]} : vector<4x128xf32> to vector<4x32xf32>
    %134 = vector.extract_strided_slice %131 {offsets = [0, 64], sizes = [4, 32], strides = [1, 1]} : vector<4x128xf32> to vector<4x32xf32>
    %135 = vector.extract_strided_slice %130 {offsets = [0, 96], sizes = [4, 32], strides = [1, 1]} : vector<4x128xf32> to vector<4x32xf32>
    %136 = arith.mulf %133, %101 : vector<4x32xf32>
    %137 = arith.mulf %132, %134 : vector<4x32xf32>
    %138 = arith.addf %136, %137 : vector<4x32xf32>
    %139 = math.tanh %138 : vector<4x32xf32>
    %140 = arith.mulf %135, %139 : vector<4x32xf32>
    %141 = tpu.concatenate %140, %122 in 1 : vector<4x32xf32>, vector<4x32xf32> -> vector<4x64xf32>
    %cst_30 = arith.constant dense<0.000000e+00> : vector<4x128xf32>
    %142 = tpu.matmul %141, %3, %cst_30 {dimension_numbers = #tpu.dot_dimension_numbers<[1], [0], [0], [1], [0, 0, 1, 1], [], []>} : vector<4x64xf32>, vector<64x128xf32>, vector<4x128xf32> -> vector<4x128xf32>
    %143 = vector.broadcast %4 : vector<1x128xf32> to vector<4x128xf32>
    %144 = arith.addf %142, %143 : vector<4x128xf32>
    %145 = arith.negf %144 : vector<4x128xf32>
    %146 = math.exp %145 : vector<4x128xf32>
    %cst_31 = arith.constant 1.000000e+00 : f32
    %147 = vector.broadcast %cst_31 : f32 to vector<4x128xf32>
    %148 = arith.addf %147, %146 : vector<4x128xf32>
    %149 = arith.divf %147, %148 : vector<4x128xf32>
    %150 = math.tanh %144 : vector<4x128xf32>
    %151 = vector.extract_strided_slice %149 {offsets = [0, 0], sizes = [4, 32], strides = [1, 1]} : vector<4x128xf32> to vector<4x32xf32>
    %152 = vector.extract_strided_slice %149 {offsets = [0, 32], sizes = [4, 32], strides = [1, 1]} : vector<4x128xf32> to vector<4x32xf32>
    %153 = vector.extract_strided_slice %150 {offsets = [0, 64], sizes = [4, 32], strides = [1, 1]} : vector<4x128xf32> to vector<4x32xf32>
    %154 = vector.extract_strided_slice %149 {offsets = [0, 96], sizes = [4, 32], strides = [1, 1]} : vector<4x128xf32> to vector<4x32xf32>
    %155 = arith.mulf %152, %120 : vector<4x32xf32>
    %156 = arith.mulf %151, %153 : vector<4x32xf32>
    %157 = arith.addf %155, %156 : vector<4x32xf32>
    %158 = math.tanh %157 : vector<4x32xf32>
    %159 = arith.mulf %154, %158 : vector<4x32xf32>
    %160 = vector.extract_strided_slice %10 {offsets = [16, 0], sizes = [4, 128], strides = [1, 1]} : vector<32x128xf32> to vector<4x128xf32>
    %cst_32 = arith.constant dense<0.000000e+00> : vector<4x128xf32>
    %161 = tpu.matmul %140, %1, %cst_32 {dimension_numbers = #tpu.dot_dimension_numbers<[1], [0], [0], [1], [0, 0, 1, 1], [], []>} : vector<4x32xf32>, vector<32x128xf32>, vector<4x128xf32> -> vector<4x128xf32>
    %162 = arith.addf %160, %161 : vector<4x128xf32>
    %163 = arith.negf %162 : vector<4x128xf32>
    %164 = math.exp %163 : vector<4x128xf32>
    %cst_33 = arith.constant 1.000000e+00 : f32
    %165 = vector.broadcast %cst_33 : f32 to vector<4x128xf32>
    %166 = arith.addf %165, %164 : vector<4x128xf32>
    %167 = arith.divf %165, %166 : vector<4x128xf32>
    %168 = math.tanh %162 : vector<4x128xf32>
    %169 = vector.extract_strided_slice %167 {offsets = [0, 0], sizes = [4, 32], strides = [1, 1]} : vector<4x128xf32> to vector<4x32xf32>
    %170 = vector.extract_strided_slice %167 {offsets = [0, 32], sizes = [4, 32], strides = [1, 1]} : vector<4x128xf32> to vector<4x32xf32>
    %171 = vector.extract_strided_slice %168 {offsets = [0, 64], sizes = [4, 32], strides = [1, 1]} : vector<4x128xf32> to vector<4x32xf32>
    %172 = vector.extract_strided_slice %167 {offsets = [0, 96], sizes = [4, 32], strides = [1, 1]} : vector<4x128xf32> to vector<4x32xf32>
    %173 = arith.mulf %170, %138 : vector<4x32xf32>
    %174 = arith.mulf %169, %171 : vector<4x32xf32>
    %175 = arith.addf %173, %174 : vector<4x32xf32>
    %176 = math.tanh %175 : vector<4x32xf32>
    %177 = arith.mulf %172, %176 : vector<4x32xf32>
    %178 = tpu.concatenate %177, %159 in 1 : vector<4x32xf32>, vector<4x32xf32> -> vector<4x64xf32>
    %cst_34 = arith.constant dense<0.000000e+00> : vector<4x128xf32>
    %179 = tpu.matmul %178, %3, %cst_34 {dimension_numbers = #tpu.dot_dimension_numbers<[1], [0], [0], [1], [0, 0, 1, 1], [], []>} : vector<4x64xf32>, vector<64x128xf32>, vector<4x128xf32> -> vector<4x128xf32>
    %180 = vector.broadcast %4 : vector<1x128xf32> to vector<4x128xf32>
    %181 = arith.addf %179, %180 : vector<4x128xf32>
    %182 = arith.negf %181 : vector<4x128xf32>
    %183 = math.exp %182 : vector<4x128xf32>
    %cst_35 = arith.constant 1.000000e+00 : f32
    %184 = vector.broadcast %cst_35 : f32 to vector<4x128xf32>
    %185 = arith.addf %184, %183 : vector<4x128xf32>
    %186 = arith.divf %184, %185 : vector<4x128xf32>
    %187 = math.tanh %181 : vector<4x128xf32>
    %188 = vector.extract_strided_slice %186 {offsets = [0, 0], sizes = [4, 32], strides = [1, 1]} : vector<4x128xf32> to vector<4x32xf32>
    %189 = vector.extract_strided_slice %186 {offsets = [0, 32], sizes = [4, 32], strides = [1, 1]} : vector<4x128xf32> to vector<4x32xf32>
    %190 = vector.extract_strided_slice %187 {offsets = [0, 64], sizes = [4, 32], strides = [1, 1]} : vector<4x128xf32> to vector<4x32xf32>
    %191 = vector.extract_strided_slice %186 {offsets = [0, 96], sizes = [4, 32], strides = [1, 1]} : vector<4x128xf32> to vector<4x32xf32>
    %192 = arith.mulf %189, %157 : vector<4x32xf32>
    %193 = arith.mulf %188, %190 : vector<4x32xf32>
    %194 = arith.addf %192, %193 : vector<4x32xf32>
    %195 = math.tanh %194 : vector<4x32xf32>
    %196 = arith.mulf %191, %195 : vector<4x32xf32>
    %197 = vector.extract_strided_slice %10 {offsets = [20, 0], sizes = [4, 128], strides = [1, 1]} : vector<32x128xf32> to vector<4x128xf32>
    %cst_36 = arith.constant dense<0.000000e+00> : vector<4x128xf32>
    %198 = tpu.matmul %177, %1, %cst_36 {dimension_numbers = #tpu.dot_dimension_numbers<[1], [0], [0], [1], [0, 0, 1, 1], [], []>} : vector<4x32xf32>, vector<32x128xf32>, vector<4x128xf32> -> vector<4x128xf32>
    %199 = arith.addf %197, %198 : vector<4x128xf32>
    %200 = arith.negf %199 : vector<4x128xf32>
    %201 = math.exp %200 : vector<4x128xf32>
    %cst_37 = arith.constant 1.000000e+00 : f32
    %202 = vector.broadcast %cst_37 : f32 to vector<4x128xf32>
    %203 = arith.addf %202, %201 : vector<4x128xf32>
    %204 = arith.divf %202, %203 : vector<4x128xf32>
    %205 = math.tanh %199 : vector<4x128xf32>
    %206 = vector.extract_strided_slice %204 {offsets = [0, 0], sizes = [4, 32], strides = [1, 1]} : vector<4x128xf32> to vector<4x32xf32>
    %207 = vector.extract_strided_slice %204 {offsets = [0, 32], sizes = [4, 32], strides = [1, 1]} : vector<4x128xf32> to vector<4x32xf32>
    %208 = vector.extract_strided_slice %205 {offsets = [0, 64], sizes = [4, 32], strides = [1, 1]} : vector<4x128xf32> to vector<4x32xf32>
    %209 = vector.extract_strided_slice %204 {offsets = [0, 96], sizes = [4, 32], strides = [1, 1]} : vector<4x128xf32> to vector<4x32xf32>
    %210 = arith.mulf %207, %175 : vector<4x32xf32>
    %211 = arith.mulf %206, %208 : vector<4x32xf32>
    %212 = arith.addf %210, %211 : vector<4x32xf32>
    %213 = math.tanh %212 : vector<4x32xf32>
    %214 = arith.mulf %209, %213 : vector<4x32xf32>
    %215 = tpu.concatenate %214, %196 in 1 : vector<4x32xf32>, vector<4x32xf32> -> vector<4x64xf32>
    %cst_38 = arith.constant dense<0.000000e+00> : vector<4x128xf32>
    %216 = tpu.matmul %215, %3, %cst_38 {dimension_numbers = #tpu.dot_dimension_numbers<[1], [0], [0], [1], [0, 0, 1, 1], [], []>} : vector<4x64xf32>, vector<64x128xf32>, vector<4x128xf32> -> vector<4x128xf32>
    %217 = vector.broadcast %4 : vector<1x128xf32> to vector<4x128xf32>
    %218 = arith.addf %216, %217 : vector<4x128xf32>
    %219 = arith.negf %218 : vector<4x128xf32>
    %220 = math.exp %219 : vector<4x128xf32>
    %cst_39 = arith.constant 1.000000e+00 : f32
    %221 = vector.broadcast %cst_39 : f32 to vector<4x128xf32>
    %222 = arith.addf %221, %220 : vector<4x128xf32>
    %223 = arith.divf %221, %222 : vector<4x128xf32>
    %224 = math.tanh %218 : vector<4x128xf32>
    %225 = vector.extract_strided_slice %223 {offsets = [0, 0], sizes = [4, 32], strides = [1, 1]} : vector<4x128xf32> to vector<4x32xf32>
    %226 = vector.extract_strided_slice %223 {offsets = [0, 32], sizes = [4, 32], strides = [1, 1]} : vector<4x128xf32> to vector<4x32xf32>
    %227 = vector.extract_strided_slice %224 {offsets = [0, 64], sizes = [4, 32], strides = [1, 1]} : vector<4x128xf32> to vector<4x32xf32>
    %228 = vector.extract_strided_slice %223 {offsets = [0, 96], sizes = [4, 32], strides = [1, 1]} : vector<4x128xf32> to vector<4x32xf32>
    %229 = arith.mulf %226, %194 : vector<4x32xf32>
    %230 = arith.mulf %225, %227 : vector<4x32xf32>
    %231 = arith.addf %229, %230 : vector<4x32xf32>
    %232 = math.tanh %231 : vector<4x32xf32>
    %233 = arith.mulf %228, %232 : vector<4x32xf32>
    %234 = vector.extract_strided_slice %10 {offsets = [24, 0], sizes = [4, 128], strides = [1, 1]} : vector<32x128xf32> to vector<4x128xf32>
    %cst_40 = arith.constant dense<0.000000e+00> : vector<4x128xf32>
    %235 = tpu.matmul %214, %1, %cst_40 {dimension_numbers = #tpu.dot_dimension_numbers<[1], [0], [0], [1], [0, 0, 1, 1], [], []>} : vector<4x32xf32>, vector<32x128xf32>, vector<4x128xf32> -> vector<4x128xf32>
    %236 = arith.addf %234, %235 : vector<4x128xf32>
    %237 = arith.negf %236 : vector<4x128xf32>
    %238 = math.exp %237 : vector<4x128xf32>
    %cst_41 = arith.constant 1.000000e+00 : f32
    %239 = vector.broadcast %cst_41 : f32 to vector<4x128xf32>
    %240 = arith.addf %239, %238 : vector<4x128xf32>
    %241 = arith.divf %239, %240 : vector<4x128xf32>
    %242 = math.tanh %236 : vector<4x128xf32>
    %243 = vector.extract_strided_slice %241 {offsets = [0, 0], sizes = [4, 32], strides = [1, 1]} : vector<4x128xf32> to vector<4x32xf32>
    %244 = vector.extract_strided_slice %241 {offsets = [0, 32], sizes = [4, 32], strides = [1, 1]} : vector<4x128xf32> to vector<4x32xf32>
    %245 = vector.extract_strided_slice %242 {offsets = [0, 64], sizes = [4, 32], strides = [1, 1]} : vector<4x128xf32> to vector<4x32xf32>
    %246 = vector.extract_strided_slice %241 {offsets = [0, 96], sizes = [4, 32], strides = [1, 1]} : vector<4x128xf32> to vector<4x32xf32>
    %247 = arith.mulf %244, %212 : vector<4x32xf32>
    %248 = arith.mulf %243, %245 : vector<4x32xf32>
    %249 = arith.addf %247, %248 : vector<4x32xf32>
    %250 = math.tanh %249 : vector<4x32xf32>
    %251 = arith.mulf %246, %250 : vector<4x32xf32>
    %252 = tpu.concatenate %251, %233 in 1 : vector<4x32xf32>, vector<4x32xf32> -> vector<4x64xf32>
    %cst_42 = arith.constant dense<0.000000e+00> : vector<4x128xf32>
    %253 = tpu.matmul %252, %3, %cst_42 {dimension_numbers = #tpu.dot_dimension_numbers<[1], [0], [0], [1], [0, 0, 1, 1], [], []>} : vector<4x64xf32>, vector<64x128xf32>, vector<4x128xf32> -> vector<4x128xf32>
    %254 = vector.broadcast %4 : vector<1x128xf32> to vector<4x128xf32>
    %255 = arith.addf %253, %254 : vector<4x128xf32>
    %256 = arith.negf %255 : vector<4x128xf32>
    %257 = math.exp %256 : vector<4x128xf32>
    %cst_43 = arith.constant 1.000000e+00 : f32
    %258 = vector.broadcast %cst_43 : f32 to vector<4x128xf32>
    %259 = arith.addf %258, %257 : vector<4x128xf32>
    %260 = arith.divf %258, %259 : vector<4x128xf32>
    %261 = math.tanh %255 : vector<4x128xf32>
    %262 = vector.extract_strided_slice %260 {offsets = [0, 0], sizes = [4, 32], strides = [1, 1]} : vector<4x128xf32> to vector<4x32xf32>
    %263 = vector.extract_strided_slice %260 {offsets = [0, 32], sizes = [4, 32], strides = [1, 1]} : vector<4x128xf32> to vector<4x32xf32>
    %264 = vector.extract_strided_slice %261 {offsets = [0, 64], sizes = [4, 32], strides = [1, 1]} : vector<4x128xf32> to vector<4x32xf32>
    %265 = vector.extract_strided_slice %260 {offsets = [0, 96], sizes = [4, 32], strides = [1, 1]} : vector<4x128xf32> to vector<4x32xf32>
    %266 = arith.mulf %263, %231 : vector<4x32xf32>
    %267 = arith.mulf %262, %264 : vector<4x32xf32>
    %268 = arith.addf %266, %267 : vector<4x32xf32>
    %269 = math.tanh %268 : vector<4x32xf32>
    %270 = arith.mulf %265, %269 : vector<4x32xf32>
    %271 = vector.extract_strided_slice %10 {offsets = [28, 0], sizes = [4, 128], strides = [1, 1]} : vector<32x128xf32> to vector<4x128xf32>
    %cst_44 = arith.constant dense<0.000000e+00> : vector<4x128xf32>
    %272 = tpu.matmul %251, %1, %cst_44 {dimension_numbers = #tpu.dot_dimension_numbers<[1], [0], [0], [1], [0, 0, 1, 1], [], []>} : vector<4x32xf32>, vector<32x128xf32>, vector<4x128xf32> -> vector<4x128xf32>
    %273 = arith.addf %271, %272 : vector<4x128xf32>
    %274 = arith.negf %273 : vector<4x128xf32>
    %275 = math.exp %274 : vector<4x128xf32>
    %cst_45 = arith.constant 1.000000e+00 : f32
    %276 = vector.broadcast %cst_45 : f32 to vector<4x128xf32>
    %277 = arith.addf %276, %275 : vector<4x128xf32>
    %278 = arith.divf %276, %277 : vector<4x128xf32>
    %279 = math.tanh %273 : vector<4x128xf32>
    %280 = vector.extract_strided_slice %278 {offsets = [0, 0], sizes = [4, 32], strides = [1, 1]} : vector<4x128xf32> to vector<4x32xf32>
    %281 = vector.extract_strided_slice %278 {offsets = [0, 32], sizes = [4, 32], strides = [1, 1]} : vector<4x128xf32> to vector<4x32xf32>
    %282 = vector.extract_strided_slice %279 {offsets = [0, 64], sizes = [4, 32], strides = [1, 1]} : vector<4x128xf32> to vector<4x32xf32>
    %283 = vector.extract_strided_slice %278 {offsets = [0, 96], sizes = [4, 32], strides = [1, 1]} : vector<4x128xf32> to vector<4x32xf32>
    %284 = arith.mulf %281, %249 : vector<4x32xf32>
    %285 = arith.mulf %280, %282 : vector<4x32xf32>
    %286 = arith.addf %284, %285 : vector<4x32xf32>
    %287 = math.tanh %286 : vector<4x32xf32>
    %288 = arith.mulf %283, %287 : vector<4x32xf32>
    %289 = tpu.concatenate %288, %270 in 1 : vector<4x32xf32>, vector<4x32xf32> -> vector<4x64xf32>
    %cst_46 = arith.constant dense<0.000000e+00> : vector<4x128xf32>
    %290 = tpu.matmul %289, %3, %cst_46 {dimension_numbers = #tpu.dot_dimension_numbers<[1], [0], [0], [1], [0, 0, 1, 1], [], []>} : vector<4x64xf32>, vector<64x128xf32>, vector<4x128xf32> -> vector<4x128xf32>
    %291 = vector.broadcast %4 : vector<1x128xf32> to vector<4x128xf32>
    %292 = arith.addf %290, %291 : vector<4x128xf32>
    %293 = arith.negf %292 : vector<4x128xf32>
    %294 = math.exp %293 : vector<4x128xf32>
    %cst_47 = arith.constant 1.000000e+00 : f32
    %295 = vector.broadcast %cst_47 : f32 to vector<4x128xf32>
    %296 = arith.addf %295, %294 : vector<4x128xf32>
    %297 = arith.divf %295, %296 : vector<4x128xf32>
    %298 = math.tanh %292 : vector<4x128xf32>
    %299 = vector.extract_strided_slice %297 {offsets = [0, 0], sizes = [4, 32], strides = [1, 1]} : vector<4x128xf32> to vector<4x32xf32>
    %300 = vector.extract_strided_slice %297 {offsets = [0, 32], sizes = [4, 32], strides = [1, 1]} : vector<4x128xf32> to vector<4x32xf32>
    %301 = vector.extract_strided_slice %298 {offsets = [0, 64], sizes = [4, 32], strides = [1, 1]} : vector<4x128xf32> to vector<4x32xf32>
    %302 = vector.extract_strided_slice %297 {offsets = [0, 96], sizes = [4, 32], strides = [1, 1]} : vector<4x128xf32> to vector<4x32xf32>
    %303 = arith.mulf %300, %268 : vector<4x32xf32>
    %304 = arith.mulf %299, %301 : vector<4x32xf32>
    %305 = arith.addf %303, %304 : vector<4x32xf32>
    %306 = math.tanh %305 : vector<4x32xf32>
    %307 = arith.mulf %302, %306 : vector<4x32xf32>
    %308 = tpu.concatenate %48, %85, %122, %159, %196, %233, %270, %307 in 0 : vector<4x32xf32>, vector<4x32xf32>, vector<4x32xf32>, vector<4x32xf32>, vector<4x32xf32>, vector<4x32xf32>, vector<4x32xf32>, vector<4x32xf32> -> vector<32x32xf32>
    %cst_48 = arith.constant dense<0.000000e+00> : vector<32x64xf32>
    %309 = tpu.matmul %308, %5, %cst_48 {dimension_numbers = #tpu.dot_dimension_numbers<[1], [0], [0], [1], [0, 0, 1, 1], [], []>} : vector<32x32xf32>, vector<32x64xf32>, vector<32x64xf32> -> vector<32x64xf32>
    %310 = vector.broadcast %6 : vector<1x64xf32> to vector<32x64xf32>
    %311 = arith.addf %309, %310 : vector<32x64xf32>
    %cst_49 = arith.constant dense<0xFF800000> : vector<32xf32>
    %312 = vector.multi_reduction <maximumf>, %311, %cst_49 [1] : vector<32x64xf32> to vector<32xf32>
    %313 = vector.shape_cast %312 : vector<32xf32> to vector<32x1xf32>
    %314 = vector.broadcast %313 : vector<32x1xf32> to vector<32x64xf32>
    %315 = arith.subf %311, %314 : vector<32x64xf32>
    %316 = math.exp %315 : vector<32x64xf32>
    %cst_50 = arith.constant dense<0.000000e+00> : vector<32xf32>
    %317 = vector.multi_reduction <add>, %316, %cst_50 [1] : vector<32x64xf32> to vector<32xf32>
    %318 = vector.shape_cast %317 : vector<32xf32> to vector<32x1xf32>
    %319 = math.log %318 : vector<32x1xf32>
    %320 = vector.broadcast %319 : vector<32x1xf32> to vector<32x64xf32>
    %321 = arith.subf %315, %320 : vector<32x64xf32>
    %c0_51 = arith.constant 0 : index
    %c0_52 = arith.constant 0 : index
    %322 = vector.load %arg8[%c0_51, %c0_52] : memref<32x64xf32, #tpu.memory_space<vmem>>, vector<32x64xf32>
    tpu.vector_store %arg8[%c0_51, %c0_52], %321 {strides = array<i32>} : memref<32x64xf32, #tpu.memory_space<vmem>>, vector<32x64xf32>,
    return
  }
}

</mosaic_0001>

<bundles_post_ra>
// kernel: tpu_custom_call.1
= control target key start
LH: loop header
LB: loop body
LE: loop exit
PB: predicated region body
PF: predicated region fallthrough
CT: control target
= control target key end

     0   :  { %13 = vsyncpa [#allocation3], 0  ;;  %s3387_s0 = inlined_call_operand.vmem [shape: f32[32,16], index: 0, kind: input, shape index: {}]   ;;  %s3388_s1 = inlined_call_operand.hbm [shape: f32[16,128], index: 1, kind: input, shape index: {}]   ;;  %s3389_s2 = inlined_call_operand.vmem [shape: f32[32,128], index: 2, kind: input, shape index: {}]   ;;  %s3390_s3 = inlined_call_operand.vmem [shape: f32[1,128], index: 3, kind: input, shape index: {}]   ;;  %s3391_s4 = inlined_call_operand.hbm [shape: f32[64,128], index: 4, kind: input, shape index: {}]   ;;  %s3392_s5 = inlined_call_operand.vmem [shape: f32[1,128], index: 5, kind: input, shape index: {}]   ;;  %s3393_s6 = inlined_call_operand.vmem [shape: f32[32,64], index: 6, kind: input, shape index: {}]   ;;  %s3394_s7 = inlined_call_operand.vmem [shape: f32[1,64], index: 7, kind: input, shape index: {}]   ;;  %s3395_s8 = inlined_call_operand.hbm [shape: f32[32,64], index: 8, kind: output, shape index: {}]  }
   0x1   :  { %14 = vsyncpa [#allocation6], 0 }
   0x2   :  { %15 = vsyncpa [#allocation4], 0  ;;  %s2875_s27 = smov [#allocation2]   ;;  %s2803_s9 = scalar_lea.hbm %s3388_s1, 256 }
   0x3   :  { %s23_s28 = sshll.u32 %s2875_s27, 4  ;;  %p2804_p0 = scmp.ne.s32.totalorder %s3388_s1, %s2803_s9  ;;  %s24_s28 = int_to_ptr.vmem [resolvable:$true] %s23_s28 }
   0x4   :  { %p2807_p1 = scmp.lt.u32.totalorder %s2803_s9, %s3388_s1 }
   0x6   :  { %p2809_p2 = pnand %p2807_p1, %p2804_p0 }
   0x8   :  { %2812 = shalt.err (!%p2809_p2)
}
   0x9   :  { %s2813_s14 = scalar_lea.vmem %s24_s28, 256  ;;  %p2818_p4 = scmp.lt.s32.totalorder %s24_s28, %s24_s28 }
   0xa   :  { %p2814_p3 = scmp.ne.s32.totalorder %s24_s28, %s2813_s14  ;;  %p2819_p5 = scmp.lt.s32.totalorder %s2813_s14, %s2813_s14 }
   0xc   :  { %p2820_p6 = por %p2819_p5, %p2818_p4 }
   0xe   :  { %p2821_p7 = pnand %p2820_p6, %p2814_p3 }
  0x10   :  { %2824 = shalt.err (!%p2821_p7)
}
  0x11   :  { %s2876_s15 = smov 128   ;;  %s2877_s16 = smov 8  }
  0x12   :  { %29 = dma.hbm_to_vmem [thread:$0]  %s3388_s1, 256, %s24_s28, [#allocation3], %s2876_s15, %s2876_s15, %s2877_s16  }
  0x13   :  { %s2878_s19 = smov [#allocation5]   ;;  %s2825_s23 = scalar_lea.hbm %s3391_s4, 1024 }
  0x14   :  { %s39_s20 = sshll.u32 %s2878_s19, 4  ;;  %p2826_p8 = scmp.ne.s32.totalorder %s3391_s4, %s2825_s23  ;;  %s40_s20 = int_to_ptr.vmem [resolvable:$true] %s39_s20 }
  0x15   :  { %p2829_p9 = scmp.lt.u32.totalorder %s2825_s23, %s3391_s4 }
  0x17   :  { %p2831_p10 = pnand %p2829_p9, %p2826_p8 }
  0x19   :  { %2834 = shalt.err (!%p2831_p10)
}
  0x1a   :  { %s2835_s29 = scalar_lea.vmem %s40_s20, 1024  ;;  %p2840_p12 = scmp.lt.s32.totalorder %s40_s20, %s40_s20 }
  0x1b   :  { %p2836_p11 = scmp.ne.s32.totalorder %s40_s20, %s2835_s29  ;;  %p2841_p13 = scmp.lt.s32.totalorder %s2835_s29, %s2835_s29 }
  0x1d   :  { %p2842_p0 = por %p2841_p13, %p2840_p12 }
  0x1f   :  { %p2843_p1 = pnand %p2842_p0, %p2836_p11 }
  0x21   :  { %2846 = shalt.err (!%p2843_p1)
}
  0x22   :  { %45 = dma.hbm_to_vmem [thread:$0]  %s3391_s4, 1024, %s40_s20, [#allocation6], %s2876_s15, %s2876_s15, %s2877_s16  }
  0x23   :  { %2869 = dma.done.wait [#allocation3], 256  }
  0x24   :  { %2870 = vsyncadd [#allocation3], 4294967040 }
  0x25   :  { %2871 = dma.done.wait [#allocation6], 1024  }
  0x26   :  { %2872 = vsyncadd [#allocation6], 4294966272  ;;  %v2879_v0 = vmov 0.0|0.0   ;;  %vm2880_vm0 = vmmov 0   ;;  %v2881_v1 = vmov 0.0   ;;  %vm89_vm1 = vcmask 130048  }
  0x27   :  { %2497 = vmatprep.subr.bf16.mxu1 %v2879_v0  ;;  %2247 = vmatprep.mubr.msk.f32.mxu1 %vm2880_vm0, %v2881_v1  ;;  %v58_v2 = vld [vmem:[#allocation2] sm:$0xff]  ;;  %v59_v3 = vld [vmem:[#allocation2 + $0x8] sm:$0xff]  ;;  %v62_v9 = vld [vmem:[%s3389_s2 + $0x10] sm:$0xff]  ;;  %s2882_s22 = smov 64   ;;  %vm187_vm2 = vcmask 261120   ;;  %vm297_vm3 = vcmask 523264  }
  0x28   :  { %v60_v4 = vld [vmem:[%s3389_s2] sm:$0xff]  ;;  %v2493_v5 = vpack.c.bf16 %v59_v3, %v58_v2  ;;  %v61_v6 = vld [vmem:[%s3389_s2 + $0x8] sm:$0xff]  ;;  %v63_v10 = vld [vmem:[%s3389_s2 + $0x18] sm:$0xff]  ;;  %vm1875_vm4 = vcmask 1043456  }
  0x29   :  { %v79_v7 = vld [vmem:[%s3387_s0] sm:$0xff]  ;;  %v2972_v8 = vpack.c.bf16 %v61_v6, %v60_v4  ;;  %v80_v11 = vld [vmem:[%s3387_s0 + $0x8] sm:$0xff]  ;;  %v2985_v12 = vpack.c.bf16 %v63_v10, %v62_v9  ;;  %v65_v30 = vld [vmem:[#allocation5] sm:$0xff] }
  0x2a   :  { %2233 = vmatprep.mubr.msk.f32.mxu0 %vm89_vm1, %v79_v7  ;;  %2494 = vmatprep.subr.bf16.mxu0 %v2493_v5  ;;  %v3002_v13 = vld [vmem:[%s3390_s3] ss:$0 sm:$0xff]  ;;  %s2883_s3 = smov 32   ;;  %v66_v31 = vld [vmem:[#allocation5 + $0x8] sm:$0xff]  ;;  %v68_v34 = vld [vmem:[#allocation5 + $0x18] sm:$0xff] }
  0x2b   :  { %2499 = vmatpush3.bf16.msra.mxu1 %v2972_v8  ;;  %2496 = vmatpush3.bf16.msra.mxu0 %v2493_v5  ;;  %v67_v32 = vld [vmem:[#allocation5 + $0x10] sm:$0xff]  ;;  %v3015_v33 = vpack.c.bf16 %v66_v31, %v65_v30  ;;  %v81_v35 = vld [vmem:[%s3387_s0 + $0x10] sm:$0xff]  ;;  %v82_v36 = vld [vmem:[%s3387_s0 + $0x18] sm:$0xff] }
  0x2c   :  { %2500 = vmatprep.subr.bf16.mxu1 %v2879_v0  ;;  %2503 = vmatprep.subr.bf16.mxu0 %v2879_v0  ;;  %v3024_v37 = vpack.c.bf16 %v68_v34, %v67_v32  ;;  %v69_v38 = vld [vmem:[#allocation5 + $0x20] sm:$0xff]  ;;  %v70_v39 = vld [vmem:[#allocation5 + $0x28] sm:$0xff]  ;;  %v71_v41 = vld [vmem:[#allocation5 + $0x30] sm:$0xff] }
  0x2d   :  { %v3032_v40 = vpack.c.bf16 %v70_v39, %v69_v38  ;;  %v72_v42 = vld [vmem:[#allocation5 + $0x38] sm:$0xff]  ;;  %v3069_v51 = vld [vmem:[%s3392_s5] ss:$0 sm:$0xff] }
  0x2e   :  { %2234 = vmatmul.mubr.msk.f32.vlgmr.msra.gmra.mrb[0].mxu0 %vm89_vm1, %v80_v11  ;;  %v3037_v44 = vpack.c.bf16 %v72_v42, %v71_v41 }
  0x2f   :  { %2502 = vmatpush3.bf16.msra.mxu1 %v2985_v12  ;;  %2505 = vmatpush3.bf16.msra.mxu0 %v3015_v33 }
  0x30   :  { %2515 = vmatprep.subr.bf16.mxu1 %v2879_v0  ;;  %2236 = vmatprep.mubr.msk.f32.mxu0 %vm89_vm1, %v81_v35 }
  0x31   :  { %2506 = vmatprep.subr.bf16.mxu0 %v2879_v0 }
  0x32   :  { %2248 = vmatmul.mubr.f32.vlgmr.msra.gmra.mrb[0].mxu1 %v2881_v1  ;;  %2237 = vmatmul.mubr.msk.f32.gmra.mrb[2].mxu0 %vm89_vm1, %v82_v36 }
  0x33   :  { %2517 = vmatpush3.bf16.msra.mxu1 %v2972_v8  ;;  %2277 = vmatprep.mubr.msk.f32.mxu1 %vm2880_vm0, %v2881_v1 }
  0x34   :  { %2518 = vmatprep.subr.bf16.mxu1 %v2879_v0  ;;  %2266 = vmatprep.mubr.msk.f32.mxu0 %vm2880_vm0, %v2881_v1 }
  0x35   :  { %2508 = vmatpush3.bf16.msra.mxu0 %v3024_v37 }
  0x36   :  { %2509 = vmatprep.subr.bf16.mxu0 %v2879_v0 }
  0x37   :  { %2520 = vmatpush3.bf16.msra.mxu1 %v2985_v12 }
  0x38   :  { %2521 = vmatprep.subr.bf16.mxu1 %v2879_v0 }
  0x39   :  { %2511 = vmatpush3.bf16.msra.mxu0 %v3032_v40 }
  0x3a   :  { %2512 = vmatprep.subr.bf16.mxu0 %v2879_v0 }
  0x3d   :  { %2514 = vmatpush3.bf16.msra.mxu0 %v3037_v44 }
  0x3e   :  { %2533 = vmatprep.subr.bf16.mxu0 %v2879_v0 }
 0x101   :  { %v3004_v14 = vpop.f32.mrb[0].mxu0 }
 0x102   :  { %v168_v15 = vpop.f32.mrb[1].mxu0  ;;  %v3113_v36 = vadd.f32 %v3004_v14, %v3002_v13 }
 0x103   :  { %v3007_v16 = vadd.f32 %v3002_v13, %v168_v15 }
 0x105   :  { %v257_v17 = vpop.f32.mrb[0].mxu1  ;;  %v3043_v47 = vpop.f32.mrb[2].mxu0 }
 0x106   :  { %v261_v18 = vadd.f32 %v257_v17, %v3007_v16  ;;  %v2249_v19 = vpop.f32.mrb[1].mxu1  ;;  %v3045_v48 = vpop.f32.mrb[3].mxu0 }
 0x108   :  { %2659 = vtanh.f32 %v261_v18  ;;  %v2066_v21 = vmul.f32 -1.442695, %v261_v18 }
 0x10a   :  { %2661 = vpow2.f32 %v2066_v21 }
 0x112   :  { %v2660_v20 = vpop.eup %2659 }
 0x113   :  { %271 = vrot.lane.b32.xlu0 %v2660_v20, %s2882_s22 }
 0x114   :  { %v2662_v22 = vpop.eup %2661 }
 0x115   :  { %v265_v23 = vadd.f32 1.0, %v2662_v22 }
 0x117   :  { %2663 = vrcp.f32 %v265_v23 }
 0x121   :  { %v2664_v24 = vpop.eup %2663 }
 0x122   :  { %v269_v27 = vmul.f32 0.0, %v2664_v24 }
 0x185   :  { %v272_v25 = vpop.permute.xlu0 %271 }
 0x186   :  { %v274_v26 = vmul.f32 %v2664_v24, %v272_v25 }
 0x188   :  { %276 = vrot.lane.b32.xlu0 %v274_v26, %s2883_s3 }
 0x1fa   :  { %v277_v28 = vpop.permute.xlu0 %276 }
 0x1fb   :  { %v3012_v29 = vadd.f32 %v277_v28, %v269_v27 }
 0x1fd   :  { %2665 = vtanh.f32 %v3012_v29  ;;  %v479_v15 = vrot.slane %v3012_v29, 4 }
 0x207   :  { %v2666_v43 = vpop.eup %2665 }
 0x208   :  { %282 = vrot.lane.b32.xlu1 %v2666_v43, %s2882_s22 }
 0x27a   :  { %v283_v45 = vpop.permute.xlu1 %282 }
 0x27b   :  { %v285_v46 = vmul.f32 %v2664_v24, %v283_v45 }
 0x27d   :  { %287 = vrot.lane.b32.xlu1 %v285_v46, %s2883_s3 }
 0x2ef   :  { %v288_v49 = vpop.permute.xlu1 %287 }
 0x2f0   :  { %v290_v50 = vsel %vm187_vm2, %v288_v49, 0.0  ;;  %2278 = vmatmul.mubr.msk.f32.vlgmr.msra.gmra.mrb[2].mxu1 %vm187_vm2, %v288_v49 }
 0x2f1   :  { %2267 = vmatmul.mubr.msk.f32.vlgmr.msra.gmra.mrb[4].mxu0 %vm297_vm3, %v290_v50  ;;  %2523 = vmatpush3.bf16.msra.mxu1 %v3015_v33 }
 0x2f2   :  { %2524 = vmatprep.subr.bf16.mxu1 %v2879_v0  ;;  %2535 = vmatpush3.bf16.msra.mxu0 %v2972_v8 }
 0x2f3   :  { %2536 = vmatprep.subr.bf16.mxu0 %v2879_v0  ;;  %2296 = vmatprep.mubr.msk.f32.mxu1 %vm2880_vm0, %v2881_v1 }
 0x2f4   :  { %2307 = vmatprep.mubr.msk.f32.mxu0 %vm2880_vm0, %v2881_v1 }
 0x2f5   :  { %2526 = vmatpush3.bf16.msra.mxu1 %v3024_v37 }
 0x2f6   :  { %2527 = vmatprep.subr.bf16.mxu1 %v2879_v0  ;;  %2538 = vmatpush3.bf16.msra.mxu0 %v2985_v12 }
 0x2f7   :  { %2539 = vmatprep.subr.bf16.mxu0 %v2879_v0 }
 0x2f9   :  { %2529 = vmatpush3.bf16.msra.mxu1 %v3032_v40 }
 0x2fa   :  { %2530 = vmatprep.subr.bf16.mxu1 %v2879_v0 }
 0x2fd   :  { %2532 = vmatpush3.bf16.msra.mxu1 %v3037_v44 }
 0x2fe   :  { %2551 = vmatprep.subr.bf16.mxu1 %v2879_v0 }
 0x3c3   :  { %v463_v52 = vpop.f32.mrb[2].mxu1 }
 0x3c4   :  { %v468_v53 = vrot.slane %v463_v52, 4  ;;  %v367_v54 = vpop.f32.mrb[4].mxu0  ;;  %v2279_v55 = vpop.f32.mrb[3].mxu1 }
 0x3c5   :  { %v368_v56 = vadd.f32 %v3069_v51, %v367_v54  ;;  %v2268_v57 = vpop.f32.mrb[5].mxu0 }
 0x3c6   :  { %v470_v58 = vadd.f32 %v468_v53, %v3007_v16 }
 0x3c7   :  { %2667 = vtanh.f32 %v368_v56  ;;  %v2069_v61 = vmul.f32 -1.442695, %v368_v56 }
 0x3c8   :  { %2669 = vtanh.f32 %v470_v58  ;;  %v2071_v62 = vmul.f32 -1.442695, %v470_v58 }
 0x3c9   :  { %2671 = vpow2.f32 %v2069_v61 }
 0x3ca   :  { %2673 = vpow2.f32 %v2071_v62 }
 0x3d1   :  { %v2668_v59 = vpop.eup %2667 }
 0x3d2   :  { %v2670_v60 = vpop.eup %2669  ;;  %380 = vrot.lane.b32.xlu0 %v2668_v59, %s2882_s22 }
 0x3d3   :  { %483 = vrot.lane.b32.xlu1 %v2670_v60, %s2882_s22  ;;  %v2672_v63 = vpop.eup %2671 }
 0x3d4   :  { %v2674_v2 = vpop.eup %2673  ;;  %v374_v3 = vadd.f32 1.0, %v2672_v63 }
 0x3d5   :  { %v474_v4 = vadd.f32 1.0, %v2674_v2 }
 0x3d6   :  { %2675 = vrcp.f32 %v374_v3 }
 0x3d7   :  { %2677 = vrcp.f32 %v474_v4 }
 0x3e0   :  { %v2676_v5 = vpop.eup %2675 }
 0x3e1   :  { %v2678_v7 = vpop.eup %2677  ;;  %v378_v16 = vmul.f32 0.0, %v2676_v5 }
 0x3e2   :  { %v481_v18 = vmul.f32 %v2678_v7, %v479_v15 }
 0x444   :  { %v381_v6 = vpop.permute.xlu0 %380 }
 0x445   :  { %v383_v9 = vmul.f32 %v2676_v5, %v381_v6  ;;  %v484_v10 = vpop.permute.xlu1 %483 }
 0x446   :  { %v486_v11 = vmul.f32 %v2678_v7, %v484_v10 }
 0x447   :  { %385 = vrot.lane.b32.xlu0 %v383_v9, %s2883_s3 }
 0x448   :  { %488 = vrot.lane.b32.xlu1 %v486_v11, %s2883_s3 }
 0x4b9   :  { %v386_v17 = vpop.permute.xlu0 %385 }
 0x4ba   :  { %v3078_v19 = vadd.f32 %v386_v17, %v378_v16  ;;  %v489_v20 = vpop.permute.xlu1 %488 }
 0x4bb   :  { %v3080_v21 = vadd.f32 %v489_v20, %v481_v18 }
 0x4bc   :  { %2679 = vtanh.f32 %v3078_v19 }
 0x4bd   :  { %2681 = vtanh.f32 %v3080_v21  ;;  %v690_v62 = vrot.slane %v3080_v21, 4 }
 0x4c6   :  { %v2680_v22 = vpop.eup %2679 }
 0x4c7   :  { %v2682_v23 = vpop.eup %2681  ;;  %391 = vrot.lane.b32.xlu0 %v2680_v22, %s2882_s22 }
 0x4c8   :  { %494 = vrot.lane.b32.xlu1 %v2682_v23, %s2882_s22 }
 0x539   :  { %v392_v24 = vpop.permute.xlu0 %391 }
 0x53a   :  { %v3086_v25 = vmul.f32 %v2676_v5, %v392_v24  ;;  %v495_v26 = vpop.permute.xlu1 %494 }
 0x53b   :  { %v497_v27 = vmul.f32 %v2678_v7, %v495_v26 }
 0x53c   :  { %v503_v28 = vrot.slane %v3086_v25, 4 }
 0x53d   :  { %499 = vrot.lane.b32.xlu0 %v497_v27, %s2883_s3  ;;  %v606_v29 = vrot.slane %v497_v27, 4 }
 0x53e   :  { %504 = vrot.lane.b32.xlu1 %v503_v28, %s2882_s22 }
 0x541   :  { %607 = vrot.lane.b32.xlu0 %v606_v29, %s2883_s3 }
 0x5af   :  { %v500_v30 = vpop.permute.xlu0 %499 }
 0x5b0   :  { %v505_v31 = vpop.permute.xlu1 %504 }
 0x5b1   :  { %v507_v32 = vsel %vm187_vm2, %v500_v30, %v505_v31 }
 0x5b2   :  { %v509_v34 = vrot.slane %v507_v32, 4 }
 0x5b3   :  { %v608_v35 = vpop.permute.xlu0 %607 }
 0x5b4   :  { %2297 = vmatmul.mubr.msk.f32.vlgmr.msra.gmra.mrb[4].mxu1 %vm297_vm3, %v509_v34  ;;  %2308 = vmatmul.mubr.msk.f32.vlgmr.msra.gmra.mrb[6].mxu0 %vm187_vm2, %v608_v35 }
 0x5b5   :  { %2541 = vmatpush3.bf16.msra.mxu0 %v3015_v33  ;;  %2553 = vmatpush3.bf16.msra.mxu1 %v2972_v8 }
 0x5b6   :  { %2542 = vmatprep.subr.bf16.mxu0 %v2879_v0  ;;  %2554 = vmatprep.subr.bf16.mxu1 %v2879_v0 }
 0x5b7   :  { %2337 = vmatprep.mubr.msk.f32.mxu1 %vm2880_vm0, %v2881_v1  ;;  %2326 = vmatprep.mubr.msk.f32.mxu0 %vm2880_vm0, %v2881_v1 }
 0x5b9   :  { %2544 = vmatpush3.bf16.msra.mxu0 %v3024_v37  ;;  %2556 = vmatpush3.bf16.msra.mxu1 %v2985_v12 }
 0x5ba   :  { %2545 = vmatprep.subr.bf16.mxu0 %v2879_v0  ;;  %2557 = vmatprep.subr.bf16.mxu1 %v2879_v0 }
 0x5bd   :  { %2547 = vmatpush3.bf16.msra.mxu0 %v3032_v40 }
 0x5be   :  { %2548 = vmatprep.subr.bf16.mxu0 %v2879_v0 }
 0x5c1   :  { %2550 = vmatpush3.bf16.msra.mxu0 %v3037_v44 }
 0x5c2   :  { %2569 = vmatprep.subr.bf16.mxu0 %v2879_v0 }
 0x687   :  { %v578_v38 = vpop.f32.mrb[4].mxu1  ;;  %v677_v39 = vpop.f32.mrb[6].mxu0 }
 0x688   :  { %v579_v41 = vadd.f32 %v3069_v51, %v578_v38  ;;  %v681_v42 = vadd.f32 %v677_v39, %v3113_v36  ;;  %v2298_v43 = vpop.f32.mrb[5].mxu1  ;;  %v2309_v45 = vpop.f32.mrb[7].mxu0 }
 0x68a   :  { %2683 = vtanh.f32 %v579_v41  ;;  %v2073_v50 = vmul.f32 -1.442695, %v579_v41  ;;  %v2075_v52 = vmul.f32 -1.442695, %v681_v42 }
 0x68b   :  { %2685 = vtanh.f32 %v681_v42 }
 0x68c   :  { %2687 = vpow2.f32 %v2073_v50 }
 0x68d   :  { %2689 = vpow2.f32 %v2075_v52 }
 0x694   :  { %v2684_v46 = vpop.eup %2683 }
 0x695   :  { %v2686_v49 = vpop.eup %2685  ;;  %591 = vrot.lane.b32.xlu1 %v2684_v46, %s2882_s22 }
 0x696   :  { %694 = vrot.lane.b32.xlu0 %v2686_v49, %s2882_s22  ;;  %v2688_v14 = vpop.eup %2687 }
 0x697   :  { %v2690_v53 = vpop.eup %2689  ;;  %v585_v54 = vadd.f32 1.0, %v2688_v14 }
 0x698   :  { %v685_v55 = vadd.f32 1.0, %v2690_v53 }
 0x699   :  { %2691 = vrcp.f32 %v585_v54 }
 0x69a   :  { %2693 = vrcp.f32 %v685_v55 }
 0x6a3   :  { %v2692_v56 = vpop.eup %2691 }
 0x6a4   :  { %v2694_v58 = vpop.eup %2693  ;;  %v589_v63 = vmul.f32 %v2692_v56, %v3078_v19 }
 0x6a5   :  { %v692_v3 = vmul.f32 %v2694_v58, %v690_v62 }
 0x707   :  { %v592_v57 = vpop.permute.xlu1 %591 }
 0x708   :  { %v594_v59 = vmul.f32 %v2692_v56, %v592_v57  ;;  %v695_v60 = vpop.permute.xlu0 %694 }
 0x709   :  { %v697_v61 = vmul.f32 %v2694_v58, %v695_v60 }
 0x70a   :  { %596 = vrot.lane.b32.xlu1 %v594_v59, %s2883_s3 }
 0x70b   :  { %699 = vrot.lane.b32.xlu0 %v697_v61, %s2883_s3 }
 0x77c   :  { %v597_v2 = vpop.permute.xlu1 %596 }
 0x77d   :  { %v3123_v4 = vadd.f32 %v597_v2, %v589_v63  ;;  %v700_v5 = vpop.permute.xlu0 %699 }
 0x77e   :  { %v3125_v6 = vadd.f32 %v700_v5, %v692_v3 }
 0x77f   :  { %2695 = vtanh.f32 %v3123_v4 }
 0x780   :  { %2697 = vtanh.f32 %v3125_v6  ;;  %v899_v46 = vrot.slane %v3125_v6, 4  ;;  %v3198_v6 = vadd.f32 %v3002_v13, %v3045_v48 }
 0x789   :  { %v2696_v7 = vpop.eup %2695 }
 0x78a   :  { %v2698_v9 = vpop.eup %2697  ;;  %602 = vrot.lane.b32.xlu1 %v2696_v7, %s2882_s22 }
 0x78b   :  { %705 = vrot.lane.b32.xlu0 %v2698_v9, %s2882_s22 }
 0x7fc   :  { %v603_v10 = vpop.permute.xlu1 %602 }
 0x7fd   :  { %v3131_v11 = vmul.f32 %v2692_v56, %v603_v10  ;;  %v706_v15 = vpop.permute.xlu0 %705 }
 0x7fe   :  { %v708_v16 = vmul.f32 %v2694_v58, %v706_v15 }
 0x7ff   :  { %714 = vrot.lane.b32.xlu0 %v3131_v11, %s2882_s22 }
 0x800   :  { %710 = vrot.lane.b32.xlu1 %v708_v16, %s2883_s3 }
 0x871   :  { %v715_v17 = vpop.permute.xlu0 %714 }
 0x872   :  { %v711_v18 = vpop.permute.xlu1 %710 }
 0x873   :  { %v717_v19 = vsel %vm187_vm2, %v711_v18, %v715_v17  ;;  %2338 = vmatmul.mubr.msk.f32.vlgmr.msra.gmra.mrb[6].mxu1 %vm187_vm2, %v711_v18 }
 0x874   :  { %2327 = vmatmul.mubr.msk.f32.vlgmr.msra.gmra.mrb[8].mxu0 %vm297_vm3, %v717_v19  ;;  %2559 = vmatpush3.bf16.msra.mxu1 %v3015_v33 }
 0x875   :  { %2560 = vmatprep.subr.bf16.mxu1 %v2879_v0  ;;  %2571 = vmatpush3.bf16.msra.mxu0 %v2972_v8 }
 0x876   :  { %2572 = vmatprep.subr.bf16.mxu0 %v2879_v0  ;;  %2356 = vmatprep.mubr.msk.f32.mxu1 %vm2880_vm0, %v2881_v1 }
 0x877   :  { %2367 = vmatprep.mubr.msk.f32.mxu0 %vm2880_vm0, %v2881_v1 }
 0x878   :  { %2562 = vmatpush3.bf16.msra.mxu1 %v3024_v37 }
 0x879   :  { %2563 = vmatprep.subr.bf16.mxu1 %v2879_v0  ;;  %2574 = vmatpush3.bf16.msra.mxu0 %v2985_v12 }
 0x87a   :  { %2575 = vmatprep.subr.bf16.mxu0 %v2879_v0 }
 0x87c   :  { %2565 = vmatpush3.bf16.msra.mxu1 %v3032_v40 }
 0x87d   :  { %2566 = vmatprep.subr.bf16.mxu1 %v2879_v0 }
 0x880   :  { %2568 = vmatpush3.bf16.msra.mxu1 %v3037_v44 }
 0x881   :  { %2587 = vmatprep.subr.bf16.mxu1 %v2879_v0 }
 0x946   :  { %v883_v20 = vpop.f32.mrb[6].mxu1 }
 0x947   :  { %v888_v21 = vrot.slane %v883_v20, 4  ;;  %v787_v22 = vpop.f32.mrb[8].mxu0  ;;  %v2339_v23 = vpop.f32.mrb[7].mxu1 }
 0x948   :  { %v788_v24 = vadd.f32 %v3069_v51, %v787_v22  ;;  %v2328_v26 = vpop.f32.mrb[9].mxu0 }
 0x949   :  { %v890_v27 = vadd.f32 %v888_v21, %v3113_v36 }
 0x94a   :  { %2699 = vtanh.f32 %v788_v24  ;;  %v2077_v30 = vmul.f32 -1.442695, %v788_v24 }
 0x94b   :  { %2701 = vtanh.f32 %v890_v27  ;;  %v2079_v31 = vmul.f32 -1.442695, %v890_v27 }
 0x94c   :  { %2703 = vpow2.f32 %v2077_v30 }
 0x94d   :  { %2705 = vpow2.f32 %v2079_v31 }
 0x954   :  { %v2700_v28 = vpop.eup %2699 }
 0x955   :  { %v2702_v29 = vpop.eup %2701  ;;  %800 = vrot.lane.b32.xlu1 %v2700_v28, %s2882_s22 }
 0x956   :  { %903 = vrot.lane.b32.xlu0 %v2702_v29, %s2882_s22  ;;  %v2704_v32 = vpop.eup %2703 }
 0x957   :  { %v2706_v34 = vpop.eup %2705  ;;  %v794_v35 = vadd.f32 1.0, %v2704_v32 }
 0x958   :  { %v894_v38 = vadd.f32 1.0, %v2706_v34 }
 0x959   :  { %2707 = vrcp.f32 %v794_v35 }
 0x95a   :  { %2709 = vrcp.f32 %v894_v38 }
 0x963   :  { %v2708_v39 = vpop.eup %2707 }
 0x964   :  { %v2710_v41 = vpop.eup %2709  ;;  %v798_v49 = vmul.f32 %v2708_v39, %v3123_v4 }
 0x965   :  { %v901_v52 = vmul.f32 %v2710_v41, %v899_v46 }
 0x9c7   :  { %v801_v36 = vpop.permute.xlu1 %800 }
 0x9c8   :  { %v803_v42 = vmul.f32 %v2708_v39, %v801_v36  ;;  %v904_v43 = vpop.permute.xlu0 %903 }
 0x9c9   :  { %v906_v45 = vmul.f32 %v2710_v41, %v904_v43 }
 0x9ca   :  { %805 = vrot.lane.b32.xlu1 %v803_v42, %s2883_s3 }
 0x9cb   :  { %908 = vrot.lane.b32.xlu0 %v906_v45, %s2883_s3 }
 0xa3c   :  { %v806_v50 = vpop.permute.xlu1 %805 }
 0xa3d   :  { %v3163_v14 = vadd.f32 %v806_v50, %v798_v49  ;;  %v909_v53 = vpop.permute.xlu0 %908 }
 0xa3e   :  { %v3165_v54 = vadd.f32 %v909_v53, %v901_v52 }
 0xa3f   :  { %2711 = vtanh.f32 %v3163_v14 }
 0xa40   :  { %2713 = vtanh.f32 %v3165_v54  ;;  %v1110_v32 = vrot.slane %v3165_v54, 4 }
 0xa49   :  { %v2712_v55 = vpop.eup %2711 }
 0xa4a   :  { %v2714_v56 = vpop.eup %2713  ;;  %811 = vrot.lane.b32.xlu1 %v2712_v55, %s2882_s22 }
 0xa4b   :  { %914 = vrot.lane.b32.xlu0 %v2714_v56, %s2882_s22 }
 0xabc   :  { %v812_v57 = vpop.permute.xlu1 %811 }
 0xabd   :  { %v3171_v58 = vmul.f32 %v2708_v39, %v812_v57  ;;  %v915_v59 = vpop.permute.xlu0 %914 }
 0xabe   :  { %v917_v60 = vmul.f32 %v2710_v41, %v915_v59 }
 0xabf   :  { %v923_v61 = vrot.slane %v3171_v58, 4 }
 0xac0   :  { %919 = vrot.lane.b32.xlu1 %v917_v60, %s2883_s3  ;;  %v1026_v62 = vrot.slane %v917_v60, 4 }
 0xac1   :  { %924 = vrot.lane.b32.xlu0 %v923_v61, %s2882_s22 }
 0xac4   :  { %1027 = vrot.lane.b32.xlu1 %v1026_v62, %s2883_s3 }
 0xb32   :  { %v920_v63 = vpop.permute.xlu1 %919 }
 0xb33   :  { %v925_v2 = vpop.permute.xlu0 %924 }
 0xb34   :  { %v927_v3 = vsel %vm187_vm2, %v920_v63, %v925_v2 }
 0xb35   :  { %v929_v4 = vrot.slane %v927_v3, 4 }
 0xb36   :  { %v1028_v5 = vpop.permute.xlu1 %1027 }
 0xb37   :  { %2357 = vmatmul.mubr.msk.f32.vlgmr.msra.gmra.mrb[8].mxu1 %vm297_vm3, %v929_v4  ;;  %2368 = vmatmul.mubr.msk.f32.vlgmr.msra.gmra.mrb[10].mxu0 %vm187_vm2, %v1028_v5 }
 0xb38   :  { %2577 = vmatpush3.bf16.msra.mxu0 %v3015_v33  ;;  %2589 = vmatpush3.bf16.msra.mxu1 %v2972_v8 }
 0xb39   :  { %2578 = vmatprep.subr.bf16.mxu0 %v2879_v0  ;;  %2590 = vmatprep.subr.bf16.mxu1 %v2879_v0 }
 0xb3a   :  { %2397 = vmatprep.mubr.msk.f32.mxu1 %vm2880_vm0, %v2881_v1  ;;  %2386 = vmatprep.mubr.msk.f32.mxu0 %vm2880_vm0, %v2881_v1 }
 0xb3c   :  { %2580 = vmatpush3.bf16.msra.mxu0 %v3024_v37  ;;  %2592 = vmatpush3.bf16.msra.mxu1 %v2985_v12 }
 0xb3d   :  { %2581 = vmatprep.subr.bf16.mxu0 %v2879_v0  ;;  %2593 = vmatprep.subr.bf16.mxu1 %v2879_v0 }
 0xb40   :  { %2583 = vmatpush3.bf16.msra.mxu0 %v3032_v40 }
 0xb41   :  { %2584 = vmatprep.subr.bf16.mxu0 %v2879_v0 }
 0xb44   :  { %2586 = vmatpush3.bf16.msra.mxu0 %v3037_v44 }
 0xb45   :  { %2605 = vmatprep.subr.bf16.mxu0 %v2879_v0 }
 0xc0a   :  { %v998_v7 = vpop.f32.mrb[8].mxu1  ;;  %v1097_v9 = vpop.f32.mrb[10].mxu0 }
 0xc0b   :  { %v999_v10 = vadd.f32 %v3069_v51, %v998_v7  ;;  %v1101_v15 = vadd.f32 %v1097_v9, %v3198_v6  ;;  %v2358_v16 = vpop.f32.mrb[9].mxu1  ;;  %v2369_v17 = vpop.f32.mrb[11].mxu0 }
 0xc0d   :  { %2715 = vtanh.f32 %v999_v10  ;;  %v2081_v20 = vmul.f32 -1.442695, %v999_v10  ;;  %v2083_v21 = vmul.f32 -1.442695, %v1101_v15 }
 0xc0e   :  { %2717 = vtanh.f32 %v1101_v15 }
 0xc0f   :  { %2719 = vpow2.f32 %v2081_v20 }
 0xc10   :  { %2721 = vpow2.f32 %v2083_v21 }
 0xc17   :  { %v2716_v18 = vpop.eup %2715 }
 0xc18   :  { %v2718_v19 = vpop.eup %2717  ;;  %1011 = vrot.lane.b32.xlu0 %v2716_v18, %s2882_s22 }
 0xc19   :  { %1114 = vrot.lane.b32.xlu1 %v2718_v19, %s2882_s22  ;;  %v2720_v48 = vpop.eup %2719 }
 0xc1a   :  { %v2722_v22 = vpop.eup %2721  ;;  %v1005_v23 = vadd.f32 1.0, %v2720_v48 }
 0xc1b   :  { %v1105_v24 = vadd.f32 1.0, %v2722_v22 }
 0xc1c   :  { %2723 = vrcp.f32 %v1005_v23 }
 0xc1d   :  { %2725 = vrcp.f32 %v1105_v24 }
 0xc26   :  { %v2724_v26 = vpop.eup %2723 }
 0xc27   :  { %v2726_v28 = vpop.eup %2725  ;;  %v1009_v34 = vmul.f32 %v2724_v26, %v3163_v14 }
 0xc28   :  { %v1112_v38 = vmul.f32 %v2726_v28, %v1110_v32 }
 0xc8a   :  { %v1012_v27 = vpop.permute.xlu0 %1011 }
 0xc8b   :  { %v1014_v29 = vmul.f32 %v2724_v26, %v1012_v27  ;;  %v1115_v30 = vpop.permute.xlu1 %1114 }
 0xc8c   :  { %v1117_v31 = vmul.f32 %v2726_v28, %v1115_v30 }
 0xc8d   :  { %1016 = vrot.lane.b32.xlu0 %v1014_v29, %s2883_s3 }
 0xc8e   :  { %1119 = vrot.lane.b32.xlu1 %v1117_v31, %s2883_s3 }
 0xcff   :  { %v1017_v35 = vpop.permute.xlu0 %1016 }
 0xd00   :  { %v3208_v39 = vadd.f32 %v1017_v35, %v1009_v34  ;;  %v1120_v36 = vpop.permute.xlu1 %1119 }
 0xd01   :  { %v3210_v41 = vadd.f32 %v1120_v36, %v1112_v38 }
 0xd02   :  { %2727 = vtanh.f32 %v3208_v39 }
 0xd03   :  { %2729 = vtanh.f32 %v3210_v41  ;;  %v1319_v19 = vrot.slane %v3210_v41, 4 }
 0xd0c   :  { %v2728_v42 = vpop.eup %2727 }
 0xd0d   :  { %v2730_v43 = vpop.eup %2729  ;;  %1022 = vrot.lane.b32.xlu0 %v2728_v42, %s2882_s22 }
 0xd0e   :  { %1125 = vrot.lane.b32.xlu1 %v2730_v43, %s2882_s22 }
 0xd7f   :  { %v1023_v45 = vpop.permute.xlu0 %1022 }
 0xd80   :  { %v3216_v46 = vmul.f32 %v2724_v26, %v1023_v45  ;;  %v1126_v49 = vpop.permute.xlu1 %1125 }
 0xd81   :  { %v1128_v50 = vmul.f32 %v2726_v28, %v1126_v49 }
 0xd82   :  { %1134 = vrot.lane.b32.xlu1 %v3216_v46, %s2882_s22 }
 0xd83   :  { %1130 = vrot.lane.b32.xlu0 %v1128_v50, %s2883_s3 }
 0xdf4   :  { %v1135_v52 = vpop.permute.xlu1 %1134 }
 0xdf5   :  { %v1131_v14 = vpop.permute.xlu0 %1130 }
 0xdf6   :  { %v1137_v53 = vsel %vm187_vm2, %v1131_v14, %v1135_v52  ;;  %2398 = vmatmul.mubr.msk.f32.vlgmr.msra.gmra.mrb[10].mxu1 %vm187_vm2, %v1131_v14 }
 0xdf7   :  { %2387 = vmatmul.mubr.msk.f32.vlgmr.msra.gmra.mrb[12].mxu0 %vm297_vm3, %v1137_v53  ;;  %2595 = vmatpush3.bf16.msra.mxu1 %v3015_v33 }
 0xdf8   :  { %2596 = vmatprep.subr.bf16.mxu1 %v2879_v0  ;;  %2607 = vmatpush3.bf16.msra.mxu0 %v2972_v8 }
 0xdf9   :  { %2608 = vmatprep.subr.bf16.mxu0 %v2879_v0  ;;  %2416 = vmatprep.mubr.msk.f32.mxu1 %vm2880_vm0, %v2881_v1 }
 0xdfa   :  { %2427 = vmatprep.mubr.msk.f32.mxu0 %vm2880_vm0, %v2881_v1 }
 0xdfb   :  { %2598 = vmatpush3.bf16.msra.mxu1 %v3024_v37 }
 0xdfc   :  { %2599 = vmatprep.subr.bf16.mxu1 %v2879_v0  ;;  %2610 = vmatpush3.bf16.msra.mxu0 %v2985_v12 }
 0xdfd   :  { %2611 = vmatprep.subr.bf16.mxu0 %v2879_v0 }
 0xdff   :  { %2601 = vmatpush3.bf16.msra.mxu1 %v3032_v40 }
 0xe00   :  { %2602 = vmatprep.subr.bf16.mxu1 %v2879_v0 }
 0xe03   :  { %2604 = vmatpush3.bf16.msra.mxu1 %v3037_v44 }
 0xe04   :  { %2623 = vmatprep.subr.bf16.mxu1 %v2879_v0 }
 0xec9   :  { %v1303_v54 = vpop.f32.mrb[10].mxu1 }
 0xeca   :  { %v1308_v55 = vrot.slane %v1303_v54, 4  ;;  %v1207_v56 = vpop.f32.mrb[12].mxu0  ;;  %v2399_v57 = vpop.f32.mrb[11].mxu1 }
 0xecb   :  { %v1208_v59 = vadd.f32 %v3069_v51, %v1207_v56  ;;  %v2388_v60 = vpop.f32.mrb[13].mxu0 }
 0xecc   :  { %v1310_v61 = vadd.f32 %v1308_v55, %v3198_v6 }
 0xecd   :  { %2731 = vtanh.f32 %v1208_v59  ;;  %v2085_v2 = vmul.f32 -1.442695, %v1208_v59 }
 0xece   :  { %2733 = vtanh.f32 %v1310_v61  ;;  %v2087_v3 = vmul.f32 -1.442695, %v1310_v61 }
 0xecf   :  { %2735 = vpow2.f32 %v2085_v2 }
 0xed0   :  { %2737 = vpow2.f32 %v2087_v3 }
 0xed7   :  { %v2732_v62 = vpop.eup %2731 }
 0xed8   :  { %v2734_v63 = vpop.eup %2733  ;;  %1220 = vrot.lane.b32.xlu0 %v2732_v62, %s2882_s22 }
 0xed9   :  { %1323 = vrot.lane.b32.xlu1 %v2734_v63, %s2882_s22  ;;  %v2736_v4 = vpop.eup %2735 }
 0xeda   :  { %v2738_v5 = vpop.eup %2737  ;;  %v1214_v7 = vadd.f32 1.0, %v2736_v4 }
 0xedb   :  { %v1314_v9 = vadd.f32 1.0, %v2738_v5 }
 0xedc   :  { %2739 = vrcp.f32 %v1214_v7 }
 0xedd   :  { %2741 = vrcp.f32 %v1314_v9 }
 0xee6   :  { %v2740_v10 = vpop.eup %2739 }
 0xee7   :  { %v2742_v15 = vpop.eup %2741  ;;  %v1218_v20 = vmul.f32 %v2740_v10, %v3208_v39 }
 0xee8   :  { %v1321_v48 = vmul.f32 %v2742_v15, %v1319_v19 }
 0xf4a   :  { %v1221_v6 = vpop.permute.xlu0 %1220 }
 0xf4b   :  { %v1223_v16 = vmul.f32 %v2740_v10, %v1221_v6  ;;  %v1324_v17 = vpop.permute.xlu1 %1323 }
 0xf4c   :  { %v1326_v18 = vmul.f32 %v2742_v15, %v1324_v17 }
 0xf4d   :  { %1225 = vrot.lane.b32.xlu0 %v1223_v16, %s2883_s3 }
 0xf4e   :  { %1328 = vrot.lane.b32.xlu1 %v1326_v18, %s2883_s3 }
 0xfbf   :  { %v1226_v21 = vpop.permute.xlu0 %1225 }
 0xfc0   :  { %v3248_v22 = vadd.f32 %v1226_v21, %v1218_v20  ;;  %v1329_v23 = vpop.permute.xlu1 %1328 }
 0xfc1   :  { %v3250_v24 = vadd.f32 %v1329_v23, %v1321_v48 }
 0xfc2   :  { %2743 = vtanh.f32 %v3248_v22 }
 0xfc3   :  { %2745 = vtanh.f32 %v3250_v24  ;;  %v1530_v2 = vrot.slane %v3250_v24, 4 }
 0xfcc   :  { %v2744_v26 = vpop.eup %2743 }
 0xfcd   :  { %v2746_v27 = vpop.eup %2745  ;;  %1231 = vrot.lane.b32.xlu0 %v2744_v26, %s2882_s22 }
 0xfce   :  { %1334 = vrot.lane.b32.xlu1 %v2746_v27, %s2882_s22 }
0x103f   :  { %v1232_v28 = vpop.permute.xlu0 %1231 }
0x1040   :  { %v3256_v29 = vmul.f32 %v2740_v10, %v1232_v28  ;;  %v1335_v30 = vpop.permute.xlu1 %1334 }
0x1041   :  { %v1337_v31 = vmul.f32 %v2742_v15, %v1335_v30 }
0x1042   :  { %v1343_v32 = vrot.slane %v3256_v29, 4 }
0x1043   :  { %1339 = vrot.lane.b32.xlu0 %v1337_v31, %s2883_s3  ;;  %v1446_v34 = vrot.slane %v1337_v31, 4 }
0x1044   :  { %1344 = vrot.lane.b32.xlu1 %v1343_v32, %s2882_s22 }
0x1047   :  { %1447 = vrot.lane.b32.xlu0 %v1446_v34, %s2883_s3 }
0x10b5   :  { %v1340_v35 = vpop.permute.xlu0 %1339 }
0x10b6   :  { %v1345_v38 = vpop.permute.xlu1 %1344 }
0x10b7   :  { %v1347_v39 = vsel %vm187_vm2, %v1340_v35, %v1345_v38 }
0x10b8   :  { %v1349_v36 = vrot.slane %v1347_v39, 4 }
0x10b9   :  { %v1448_v41 = vpop.permute.xlu0 %1447 }
0x10ba   :  { %2417 = vmatmul.mubr.msk.f32.vlgmr.msra.gmra.mrb[12].mxu1 %vm297_vm3, %v1349_v36  ;;  %2428 = vmatmul.mubr.msk.f32.vlgmr.msra.gmra.mrb[14].mxu0 %vm187_vm2, %v1448_v41 }
0x10bb   :  { %2613 = vmatpush3.bf16.msra.mxu0 %v3015_v33  ;;  %2625 = vmatpush3.bf16.msra.mxu1 %v2972_v8  ;;  %v3282_v8 = vadd.f32 %v3043_v47, %v3002_v13 }
0x10bc   :  { %2614 = vmatprep.subr.bf16.mxu0 %v2879_v0  ;;  %2626 = vmatprep.subr.bf16.mxu1 %v2879_v0 }
0x10bd   :  { %2457 = vmatprep.mubr.msk.f32.mxu1 %vm2880_vm0, %v2881_v1  ;;  %2446 = vmatprep.mubr.msk.f32.mxu0 %vm2880_vm0, %v2881_v1 }
0x10bf   :  { %2616 = vmatpush3.bf16.msra.mxu0 %v3024_v37  ;;  %2628 = vmatpush3.bf16.msra.mxu1 %v2985_v12 }
0x10c0   :  { %2617 = vmatprep.subr.bf16.mxu0 %v2879_v0  ;;  %2629 = vmatprep.subr.bf16.mxu1 %v2879_v0 }
0x10c3   :  { %2619 = vmatpush3.bf16.msra.mxu0 %v3032_v40 }
0x10c4   :  { %2620 = vmatprep.subr.bf16.mxu0 %v2879_v0 }
0x10c7   :  { %2622 = vmatpush3.bf16.msra.mxu0 %v3037_v44 }
0x118d   :  { %v1418_v42 = vpop.f32.mrb[12].mxu1  ;;  %v1517_v43 = vpop.f32.mrb[14].mxu0 }
0x118e   :  { %v1419_v45 = vadd.f32 %v3069_v51, %v1418_v42  ;;  %v1521_v12 = vadd.f32 %v1517_v43, %v3282_v8  ;;  %v2418_v49 = vpop.f32.mrb[13].mxu1  ;;  %v2429_v50 = vpop.f32.mrb[15].mxu0 }
0x1190   :  { %2747 = vtanh.f32 %v1419_v45  ;;  %v2089_v53 = vmul.f32 -1.442695, %v1419_v45  ;;  %v2091_v54 = vmul.f32 -1.442695, %v1521_v12 }
0x1191   :  { %2749 = vtanh.f32 %v1521_v12 }
0x1192   :  { %2751 = vpow2.f32 %v2089_v53 }
0x1193   :  { %2753 = vpow2.f32 %v2091_v54 }
0x119a   :  { %v2748_v52 = vpop.eup %2747 }
0x119b   :  { %v2750_v14 = vpop.eup %2749  ;;  %1431 = vrot.lane.b32.xlu1 %v2748_v52, %s2882_s22 }
0x119c   :  { %1534 = vrot.lane.b32.xlu0 %v2750_v14, %s2882_s22  ;;  %v2752_v13 = vpop.eup %2751 }
0x119d   :  { %v2754_v47 = vpop.eup %2753  ;;  %v1425_v55 = vadd.f32 1.0, %v2752_v13 }
0x119e   :  { %v1525_v56 = vadd.f32 1.0, %v2754_v47 }
0x119f   :  { %2755 = vrcp.f32 %v1425_v55 }
0x11a0   :  { %2757 = vrcp.f32 %v1525_v56 }
0x11a9   :  { %v2756_v57 = vpop.eup %2755 }
0x11aa   :  { %v2758_v60 = vpop.eup %2757  ;;  %v1429_v3 = vmul.f32 %v2756_v57, %v3248_v22 }
0x11ab   :  { %v1532_v5 = vmul.f32 %v2758_v60, %v1530_v2 }
0x120d   :  { %v1432_v59 = vpop.permute.xlu1 %1431 }
0x120e   :  { %v1434_v61 = vmul.f32 %v2756_v57, %v1432_v59  ;;  %v1535_v62 = vpop.permute.xlu0 %1534 }
0x120f   :  { %v1537_v63 = vmul.f32 %v2758_v60, %v1535_v62 }
0x1210   :  { %1436 = vrot.lane.b32.xlu1 %v1434_v61, %s2883_s3 }
0x1211   :  { %1539 = vrot.lane.b32.xlu0 %v1537_v63, %s2883_s3 }
0x1282   :  { %v1437_v4 = vpop.permute.xlu1 %1436 }
0x1283   :  { %v1439_v7 = vadd.f32 %v1437_v4, %v1429_v3  ;;  %v1540_v9 = vpop.permute.xlu0 %1539 }
0x1284   :  { %v1542_v10 = vadd.f32 %v1540_v9, %v1532_v5 }
0x1285   :  { %2759 = vtanh.f32 %v1439_v7 }
0x1286   :  { %2761 = vtanh.f32 %v1542_v10 }
0x128f   :  { %v2760_v6 = vpop.eup %2759 }
0x1290   :  { %v2762_v15 = vpop.eup %2761  ;;  %1442 = vrot.lane.b32.xlu1 %v2760_v6, %s2882_s22  ;;  %v1866_v6 = vrot.slane %v3131_v11, 4 }
0x1291   :  { %1545 = vrot.lane.b32.xlu0 %v2762_v15, %s2882_s22 }
0x1292   :  { %v1876_v15 = vsel %vm1875_vm4, %v3086_v25, %v1866_v6  ;;  %v76_v25 = vld [vmem:[%s3393_s6 + $0x10] sm:$0xff] }
0x1302   :  { %v1443_v16 = vpop.permute.xlu1 %1442 }
0x1303   :  { %v3294_v17 = vmul.f32 %v2756_v57, %v1443_v16  ;;  %v1546_v18 = vpop.permute.xlu0 %1545  ;;  %v74_v16 = vld [vmem:[%s3393_s6] sm:$0xff] }
0x1304   :  { %v1548_v19 = vmul.f32 %v2758_v60, %v1546_v18  ;;  %v75_v18 = vld [vmem:[%s3393_s6 + $0x8] sm:$0xff] }
0x1305   :  { %1554 = vrot.lane.b32.xlu0 %v3294_v17, %s2882_s22 }
0x1306   :  { %1550 = vrot.lane.b32.xlu1 %v1548_v19, %s2883_s3  ;;  %v2641_v19 = vpack.c.bf16 %v75_v18, %v74_v16 }
0x1308   :  { %2642 = vmatprep.subr.bf16.mxu0 %v2641_v19 }
0x1377   :  { %v1555_v20 = vpop.permute.xlu0 %1554 }
0x1378   :  { %v1551_v21 = vpop.permute.xlu1 %1550 }
0x1379   :  { %v1557_v48 = vsel %vm187_vm2, %v1551_v21, %v1555_v20  ;;  %2458 = vmatmul.mubr.msk.f32.vlgmr.msra.gmra.mrb[14].mxu1 %vm187_vm2, %v1551_v21 }
0x137a   :  { %2447 = vmatmul.mubr.msk.f32.vlgmr.msra.gmra.mrb[16].mxu0 %vm297_vm3, %v1557_v48  ;;  %2631 = vmatpush3.bf16.msra.mxu1 %v3015_v33 }
0x137b   :  { %2632 = vmatprep.subr.bf16.mxu1 %v2879_v0  ;;  %2476 = vmatprep.mubr.msk.f32.mxu1 %vm2880_vm0, %v2881_v1 }
0x137c   :  { %2644 = vmatpush3.bf16.msra.mxu0 %v2641_v19 }
0x137e   :  { %2634 = vmatpush3.bf16.msra.mxu1 %v3024_v37 }
0x137f   :  { %2635 = vmatprep.subr.bf16.mxu1 %v2879_v0 }
0x1382   :  { %2637 = vmatpush3.bf16.msra.mxu1 %v3032_v40 }
0x1383   :  { %2638 = vmatprep.subr.bf16.mxu1 %v2879_v0 }
0x1386   :  { %2640 = vmatpush3.bf16.msra.mxu1 %v3037_v44 }
0x144c   :  { %v1723_v22 = vpop.f32.mrb[14].mxu1 }
0x144d   :  { %v1728_v23 = vrot.slane %v1723_v22, 4  ;;  %v1627_v24 = vpop.f32.mrb[16].mxu0  ;;  %v2459_v26 = vpop.f32.mrb[15].mxu1 }
0x144e   :  { %v1628_v33 = vadd.f32 %v3069_v51, %v1627_v24  ;;  %v2448_v27 = vpop.f32.mrb[17].mxu0  ;;  %v1868_v24 = vrot.slane %v3216_v46, 4 }
0x144f   :  { %v1730_v28 = vadd.f32 %v1728_v23, %v3282_v8  ;;  %v1739_v8 = vrot.slane %v1542_v10, 4 }
0x1450   :  { %2763 = vtanh.f32 %v1628_v33  ;;  %v2093_v0 = vmul.f32 -1.442695, %v1628_v33  ;;  %v1877_v26 = vsel %vm1875_vm4, %v3171_v58, %v1868_v24  ;;  %v2098_v58 = vld [vmem:[%s3394_s7] ss:$0 sm:$0xff]  ;;  %s2884_s7 = smov [#allocation7]  }
0x1451   :  { %2765 = vtanh.f32 %v1730_v28  ;;  %v2095_v40 = vmul.f32 -1.442695, %v1730_v28  ;;  %s2048_s12 = sshll.u32 %s2884_s7, 4  ;;  %s2049_s12 = int_to_ptr.vmem [resolvable:$true] %s2048_s12 }
0x1452   :  { %2767 = vpow2.f32 %v2093_v0  ;;  %s2847_s13 = scalar_lea.vmem %s2049_s12, 512  ;;  %p2852_p3 = scmp.lt.s32.totalorder %s2049_s12, %s2049_s12 }
0x1453   :  { %2769 = vpow2.f32 %v2095_v40  ;;  %p2848_p2 = scmp.ne.s32.totalorder %s2049_s12, %s2847_s13  ;;  %p2853_p4 = scmp.lt.s32.totalorder %s2847_s13, %s2847_s13 }
0x1455   :  { %p2854_p5 = por %p2853_p4, %p2852_p3 }
0x1457   :  { %p2855_p6 = pnand %p2854_p5, %p2848_p2 }
0x145a   :  { %v2764_v1 = vpop.eup %2763 }
0x145b   :  { %v2766_v37 = vpop.eup %2765  ;;  %1640 = vrot.lane.b32.xlu1 %v2764_v1, %s2882_s22 }
0x145c   :  { %1743 = vrot.lane.b32.xlu0 %v2766_v37, %s2882_s22  ;;  %v2768_v44 = vpop.eup %2767 }
0x145d   :  { %v2770_v30 = vpop.eup %2769  ;;  %v1634_v31 = vadd.f32 1.0, %v2768_v44 }
0x145e   :  { %v1734_v32 = vadd.f32 1.0, %v2770_v30 }
0x145f   :  { %2771 = vrcp.f32 %v1634_v31 }
0x1460   :  { %2773 = vrcp.f32 %v1734_v32 }
0x1469   :  { %v2772_v34 = vpop.eup %2771 }
0x146a   :  { %v2774_v38 = vpop.eup %2773  ;;  %v1638_v42 = vmul.f32 %v2772_v34, %v1439_v7 }
0x146b   :  { %v1741_v45 = vmul.f32 %v2774_v38, %v1739_v8 }
0x14cd   :  { %v1641_v35 = vpop.permute.xlu1 %1640 }
0x14ce   :  { %v1643_v39 = vmul.f32 %v2772_v34, %v1641_v35  ;;  %v1744_v36 = vpop.permute.xlu0 %1743 }
0x14cf   :  { %v1746_v41 = vmul.f32 %v2774_v38, %v1744_v36 }
0x14d0   :  { %1645 = vrot.lane.b32.xlu1 %v1643_v39, %s2883_s3 }
0x14d1   :  { %1748 = vrot.lane.b32.xlu0 %v1746_v41, %s2883_s3 }
0x1542   :  { %v1646_v43 = vpop.permute.xlu1 %1645 }
0x1543   :  { %v1648_v12 = vadd.f32 %v1646_v43, %v1638_v42  ;;  %v1749_v49 = vpop.permute.xlu0 %1748 }
0x1544   :  { %v1751_v50 = vadd.f32 %v1749_v49, %v1741_v45 }
0x1545   :  { %2775 = vtanh.f32 %v1648_v12 }
0x1546   :  { %2777 = vtanh.f32 %v1751_v50 }
0x154f   :  { %v2776_v52 = vpop.eup %2775 }
0x1550   :  { %v2778_v14 = vpop.eup %2777  ;;  %1651 = vrot.lane.b32.xlu1 %v2776_v52, %s2882_s22 }
0x1551   :  { %1754 = vrot.lane.b32.xlu0 %v2778_v14, %s2882_s22 }
0x15c2   :  { %v1652_v53 = vpop.permute.xlu1 %1651 }
0x15c3   :  { %v1654_v54 = vmul.f32 %v2772_v34, %v1652_v53  ;;  %v1755_v13 = vpop.permute.xlu0 %1754 }
0x15c4   :  { %v1757_v47 = vmul.f32 %v2774_v38, %v1755_v13 }
0x15c5   :  { %v1763_v55 = vrot.slane %v1654_v54, 4 }
0x15c6   :  { %1759 = vrot.lane.b32.xlu1 %v1757_v47, %s2883_s3 }
0x15c7   :  { %1764 = vrot.lane.b32.xlu0 %v1763_v55, %s2882_s22 }
0x1638   :  { %v1760_v56 = vpop.permute.xlu1 %1759 }
0x1639   :  { %v1765_v57 = vpop.permute.xlu0 %1764 }
0x163a   :  { %v1767_v59 = vsel %vm187_vm2, %v1760_v56, %v1765_v57 }
0x163b   :  { %v1769_v60 = vrot.slane %v1767_v59, 4 }
0x163d   :  { %2477 = vmatmul.mubr.msk.f32.vlgmr.msra.gmra.mrb[16].mxu1 %vm297_vm3, %v1769_v60 }
0x1710   :  { %v1838_v61 = vpop.f32.mrb[16].mxu1 }
0x1711   :  { %v1839_v62 = vadd.f32 %v3069_v51, %v1838_v61  ;;  %v2478_v63 = vpop.f32.mrb[17].mxu1  ;;  %v1870_v51 = vrot.slane %v3294_v17, 4  ;;  %v77_v17 = vld [vmem:[%s3393_s6 + $0x18] sm:$0xff] }
0x1712   :  { %v2645_v21 = vpack.c.bf16 %v77_v17, %v76_v25 }
0x1713   :  { %2779 = vtanh.f32 %v1839_v62  ;;  %v2097_v3 = vmul.f32 -1.442695, %v1839_v62  ;;  %v1878_v11 = vsel %vm1875_vm4, %v3256_v29, %v1870_v51 }
0x1714   :  { %2646 = vmatprep.subr.bf16.mxu0 %v2645_v21 }
0x1715   :  { %2781 = vpow2.f32 %v2097_v3  ;;  %2648 = vmatpush3.bf16.msra.mxu0 %v2645_v21 }
0x171d   :  { %v2780_v2 = vpop.eup %2779 }
0x171e   :  { %1851 = vrot.lane.b32.xlu1 %v2780_v2, %s2882_s22 }
0x171f   :  { %v2782_v4 = vpop.eup %2781 }
0x1720   :  { %v1845_v5 = vadd.f32 1.0, %v2782_v4 }
0x1722   :  { %2783 = vrcp.f32 %v1845_v5 }
0x172c   :  { %v2784_v7 = vpop.eup %2783 }
0x172d   :  { %v1849_v20 = vmul.f32 %v2784_v7, %v1648_v12 }
0x1790   :  { %v1852_v9 = vpop.permute.xlu1 %1851 }
0x1791   :  { %v1854_v10 = vmul.f32 %v2784_v7, %v1852_v9 }
0x1793   :  { %1856 = vrot.lane.b32.xlu0 %v1854_v10, %s2883_s3 }
0x1797   :  { %1890 = vrot.lane.b32.xlu0 %v1876_v15, %s2883_s3 }
0x179b   :  { %1894 = vrot.lane.b32.xlu0 %v1878_v11, %s2883_s3 }
0x1805   :  { %v1857_v48 = vpop.permute.xlu0 %1856 }
0x1806   :  { %v1859_v22 = vadd.f32 %v1857_v48, %v1849_v20 }
0x1808   :  { %2785 = vtanh.f32 %v1859_v22 }
0x1809   :  { %v1891_v29 = vpop.permute.xlu0 %1890 }
0x180a   :  { %2487 = vmatprep.mubr.msk.f32.mxu0 %vm187_vm2, %v1891_v29 }
0x180d   :  { %v1895_v37 = vpop.permute.xlu0 %1894 }
0x1812   :  { %v2786_v23 = vpop.eup %2785 }
0x1813   :  { %1862 = vrot.lane.b32.xlu1 %v2786_v23, %s2882_s22 }
0x1817   :  { %1892 = vrot.lane.b32.xlu1 %v1877_v26, %s2883_s3 }
0x1885   :  { %v1863_v33 = vpop.permute.xlu1 %1862 }
0x1886   :  { %v1865_v27 = vmul.f32 %v2784_v7, %v1863_v33 }
0x1888   :  { %v1873_v28 = vrot.slane %v1865_v27, 4 }
0x1889   :  { %v1893_v1 = vpop.permute.xlu1 %1892 }
0x188a   :  { %2488 = vmatmul.mubr.msk.f32.vlgmr.msra.gmra.mrb[18].mxu0 %vm187_vm2, %v1893_v1  ;;  %v1879_v0 = vsel %vm1875_vm4, %v1654_v54, %v1873_v28 }
0x188b   :  { %1896 = vrot.lane.b32.xlu1 %v1879_v0, %s2883_s3  ;;  %2490 = vmatprep.mubr.msk.f32.mxu0 %vm187_vm2, %v1895_v37 }
0x18fd   :  { %v1897_v46 = vpop.permute.xlu1 %1896 }
0x18fe   :  { %2491 = vmatmul.mubr.msk.f32.gmra.mrb[20].mxu0 %vm187_vm2, %v1897_v46 }
0x195d   :  { %v2489_v40 = vpop.f32.mrb[18].mxu0 }
0x195e   :  { %v1978_v44 = vadd.f32 %v2489_v40, %v2098_v58  ;;  %v1972_v30 = vpop.f32.mrb[19].mxu0 }
0x195f   :  { %v1973_v31 = vadd.f32 %v2098_v58, %v1972_v30 }
0x1960   :  { %v1994_v32 = vsel %vm297_vm3, %v1978_v44, -inf }
0x1961   :  { %1995 = vmax.xlane.f32.xlu1 %v1994_v32  ;;  %v1991_v34 = vsel %vm297_vm3, %v1973_v31, -inf }
0x1962   :  { %1992 = vmax.xlane.f32.xlu0 %v1991_v34 }
0x19d1   :  { %v2492_v35 = vpop.f32.mrb[20].mxu0 }
0x19d2   :  { %v1982_v38 = vpop.f32.mrb[21].mxu0  ;;  %v1988_v36 = vadd.f32 %v2492_v35, %v2098_v58 }
0x19d3   :  { %v1983_v39 = vadd.f32 %v2098_v58, %v1982_v38 }
0x19d4   :  { %v2000_v8 = vsel %vm297_vm3, %v1988_v36, -inf }
0x19d5   :  { %v1997_v41 = vsel %vm297_vm3, %v1983_v39, -inf }
0x19d6   :  { %1998 = vmax.xlane.f32.xlu0 %v1997_v41 }
0x19da   :  { %2001 = vmax.xlane.f32.xlu0 %v2000_v8 }
0x19ee   :  { %v1996_v42 = vpop.xlane.xlu1 %1995 }
0x19ef   :  { %v2004_v43 = vsub.f32 %v1978_v44, %v1996_v42  ;;  %v1993_v45 = vpop.xlane.xlu0 %1992 }
0x19f0   :  { %v2003_v12 = vsub.f32 %v1973_v31, %v1993_v45 }
0x19f1   :  { %v2009_v49 = vmul.f32 1.442695, %v2004_v43 }
0x19f2   :  { %v2007_v50 = vmul.f32 1.442695, %v2003_v12 }
0x19f3   :  { %2787 = vpow2.f32 %v2009_v49 }
0x19f4   :  { %2789 = vpow2.f32 %v2007_v50 }
0x19fd   :  { %v2788_v52 = vpop.eup %2787 }
0x19fe   :  { %v2790_v14 = vpop.eup %2789  ;;  %v2018_v53 = vsel %vm297_vm3, %v2788_v52, 0.0 }
0x19ff   :  { %2019 = vadd.xlane.f32.xlu0 %v2018_v53  ;;  %v2015_v54 = vsel %vm297_vm3, %v2790_v14, 0.0 }
0x1a00   :  { %2016 = vadd.xlane.f32.xlu1 %v2015_v54 }
0x1a63   :  { %v1999_v13 = vpop.xlane.xlu0 %1998 }
0x1a64   :  { %v2005_v47 = vsub.f32 %v1983_v39, %v1999_v13 }
0x1a66   :  { %v2011_v55 = vmul.f32 1.442695, %v2005_v47 }
0x1a67   :  { %v2002_v56 = vpop.xlane.xlu0 %2001 }
0x1a68   :  { %2791 = vpow2.f32 %v2011_v55  ;;  %v2006_v57 = vsub.f32 %v1988_v36, %v2002_v56 }
0x1a6a   :  { %v2013_v59 = vmul.f32 1.442695, %v2006_v57 }
0x1a6c   :  { %2793 = vpow2.f32 %v2013_v59 }
0x1a72   :  { %v2792_v60 = vpop.eup %2791 }
0x1a73   :  { %v2021_v61 = vsel %vm297_vm3, %v2792_v60, 0.0 }
0x1a74   :  { %2022 = vadd.xlane.f32.xlu1 %v2021_v61 }
0x1a76   :  { %v2794_v62 = vpop.eup %2793 }
0x1a77   :  { %v2024_v63 = vsel %vm297_vm3, %v2794_v62, 0.0 }
0x1a78   :  { %2025 = vadd.xlane.f32.xlu0 %v2024_v63 }
0x1a8c   :  { %v2020_v2 = vpop.xlane.xlu0 %2019 }
0x1a8d   :  { %2795 = vlog2.f32 %v2020_v2  ;;  %v2017_v3 = vpop.xlane.xlu1 %2016 }
0x1a8e   :  { %2797 = vlog2.f32 %v2017_v3 }
0x1a97   :  { %v2796_v4 = vpop.eup %2795 }
0x1a98   :  { %v2798_v5 = vpop.eup %2797  ;;  %v2030_v7 = vmul.f32 0.6931472, %v2796_v4 }
0x1a99   :  { %v2028_v9 = vmul.f32 0.6931472, %v2798_v5 }
0x1a9a   :  { %v2036_v10 = vsub.f32 %v2004_v43, %v2030_v7 }
0x1a9b   :  { %v2035_v6 = vsub.f32 %v2003_v12, %v2028_v9 }
0x1a9c   :  { %2040 = vst.msk [vmem:[#allocation7 + $0x8] sm:$0xff] %vm297_vm3, %v2036_v10 }
0x1a9d   :  { %2039 = vst.msk [vmem:[#allocation7] sm:$0xff] %vm297_vm3, %v2035_v6 }
0x1b01   :  { %v2023_v51 = vpop.xlane.xlu1 %2022 }
0x1b02   :  { %2799 = vlog2.f32 %v2023_v51 }
0x1b05   :  { %v2026_v15 = vpop.xlane.xlu0 %2025 }
0x1b06   :  { %2801 = vlog2.f32 %v2026_v15 }
0x1b0c   :  { %v2800_v16 = vpop.eup %2799 }
0x1b0d   :  { %v2032_v18 = vmul.f32 0.6931472, %v2800_v16 }
0x1b0f   :  { %v2037_v19 = vsub.f32 %v2005_v47, %v2032_v18 }
0x1b10   :  { %v2802_v11 = vpop.eup %2801 }
0x1b11   :  { %2041 = vst.msk [vmem:[#allocation7 + $0x10] sm:$0xff] %vm297_vm3, %v2037_v19  ;;  %v2034_v25 = vmul.f32 0.6931472, %v2802_v11 }
0x1b13   :  { %v2038_v17 = vsub.f32 %v2006_v57, %v2034_v25 }
0x1b15   :  { %2042 = vst.msk [vmem:[#allocation7 + $0x18] sm:$0xff] %vm297_vm3, %v2038_v17 }
0x1b16   :  { %2858 = shalt.err (!%p2855_p6)
}
0x1b17   :  { %s2859_s18 = scalar_lea.hbm %s3395_s8, 512 }
0x1b18   :  { %p2860_p7 = scmp.ne.s32.totalorder %s3395_s8, %s2859_s18  ;;  %p2863_p8 = scmp.lt.u32.totalorder %s2859_s18, %s3395_s8 }
0x1b1a   :  { %p2865_p9 = pnand %p2863_p8, %p2860_p7 }
0x1b1c   :  { %2868 = shalt.err (!%p2865_p9)
}
0x1b1d   :  { %2054 = dma.vmem_to_hbm [thread:$0]  %s2049_s12, 512, %s3395_s8, [#allocation4], %s2876_s15, %s2876_s15, %s2877_s16  }
0x1b1e   :  { %2873 = dma.done.wait [#allocation4], 512  }
0x1b1f   :  { %2874 = vsyncadd [#allocation4], 4294966784 }
0x1b20   :  { %2058 = vsyncpa [#allocation3], 1 }
0x1b21   :  { %2059 = vsyncpa [#allocation6], 1 }
0x1b22   :  { %2060 = vsyncpa [#allocation4], 1 }

</bundles_post_ra>
